<compile_context>
chip_gen: v7x
topology: tpu7x:2x2x1
jax: 0.10.0
libtpu: 0.0.40
codegen_flags: <defaults>
</compile_context>

<pallas_src>
import jax
import jax.numpy as jnp
from jax.experimental import pallas as pl
from jax.experimental.pallas import tpu as pltpu


# ----------------------------------------------------------------------------
# Fused Pallas kernel: whole forward pass, whole batch, everything in VMEM
# ----------------------------------------------------------------------------
def _l2_normalize(h, eps=1e-12):
    norm = jnp.sqrt(jnp.sum(h * h, axis=-1, keepdims=True))
    return h / jnp.maximum(norm, eps)


def fused_forward_kernel(
    x_ref, adj_ref, mask_ref,
    w1_ref, b1_ref,            # sage1
    w2_ref, b2_ref,            # sage2
    wp1_ref, bp1_ref,          # pool1 fused [embed || assign] projection
    w3_ref, b3_ref,            # sage3
    wp2_ref, bp2_ref,          # pool2 fused [embed || assign] projection
    o_ref,                     # (B, H) readout
):
    hidden = w1_ref.shape[1]   # embed width of every layer (30)

    x = x_ref[...]             # (B, N, Fin)
    adj = adj_ref[...]         # (B, N, N)
    mask = mask_ref[...]       # (B, N, 1)

    def aggregate(xb, adjb):
        # neighbour aggregation: per-graph batched matmul on the MXU
        return jnp.einsum("bnm,bmf->bnf", adjb, xb,
                          preferred_element_type=jnp.float32)

    def sage(xb, adjb, w_ref, b_ref, node_mask=None):
        h = aggregate(xb, adjb)
        Bb, Nn, F = h.shape
        # batch-flatten the weight matmul: (B*N, F) @ (F, H) -> better MXU row occupancy
        hf = h.reshape(Bb * Nn, F)
        hf = jnp.dot(hf, w_ref[...], preferred_element_type=jnp.float32) + b_ref[...]
        hf = jnp.maximum(_l2_normalize(hf), 0.0)   # F.normalize(dim=2) + ReLU
        h = hf.reshape(Bb, Nn, w_ref.shape[1])
        if node_mask is not None:                  # node mask (pre-pool layers only)
            h = h * node_mask
        return h

    def diffpool(xb, adjb, w_ref, b_ref, compute_adj):
        # shared neighbour aggregation + ONE fused weight matmul for embed||assign
        h = aggregate(xb, adjb)
        Bb, Nn, F = h.shape
        hf = h.reshape(Bb * Nn, F)
        zs = jnp.dot(hf, w_ref[...], preferred_element_type=jnp.float32) + b_ref[...]

        # split branches (each branch is L2-normalized over its own feature dim)
        n_pool = zs.shape[1] - hidden
        zf = zs[:, :hidden]
        sf = zs[:, hidden:]

        # embed SAGE
        z = jnp.maximum(_l2_normalize(zf), 0.0).reshape(Bb, Nn, hidden)

        # assignment SAGE + softmax over clusters
        s = jnp.maximum(_l2_normalize(sf), 0.0).reshape(Bb, Nn, n_pool)
        s = s - jnp.max(s, axis=-1, keepdims=True)
        e = jnp.exp(s)
        s = e / jnp.sum(e, axis=-1, keepdims=True)                       # (B, N, P)

        # s^T z, contracting on the node axis (no explicit transpose)
        xn = jnp.einsum("bnp,bnh->bph", s, z, preferred_element_type=jnp.float32)
        if not compute_adj:
            # coarsened adjacency of the LAST pool is never consumed -> skip it
            return xn, None
        sa = jnp.einsum("bnp,bnm->bpm", s, adjb, preferred_element_type=jnp.float32)
        an = jnp.einsum("bpm,bmq->bpq", sa, s, preferred_element_type=jnp.float32)
        return xn, an

    # --- layer stack (mask applied only while mask.shape[1] == x.shape[1]) ---
    h = sage(x, adj, w1_ref, b1_ref, mask)
    h = sage(h, adj, w2_ref, b2_ref, mask)
    h, adj_p = diffpool(h, adj, wp1_ref, bp1_ref, compute_adj=True)
    h = sage(h, adj_p, w3_ref, b3_ref)                 # no mask after pooling
    h, _ = diffpool(h, adj_p, wp2_ref, bp2_ref, compute_adj=False)

    # readout: x.sum(dim=1), fused epilogue (only tensor that hits HBM)
    o_ref[...] = jnp.sum(h, axis=1)


# ----------------------------------------------------------------------------
# Wrapper: single pallas_call, no grid, everything resident in VMEM
# ----------------------------------------------------------------------------
def batched_model_forward(params, x, adj, mask):
    B, N, _ = x.shape
    H = params["sage1"][0].shape[1]
    mask3 = mask[:, :, None].astype(jnp.float32)

    # Fuse each DiffPool's embed/assign projections into one operand so the kernel
    # issues a single MXU push per pool (tiny one-time concat, done outside the kernel).
    wp1 = jnp.concatenate([params["pool1_embed"][0], params["pool1_assign"][0]], axis=1)
    bp1 = jnp.concatenate([params["pool1_embed"][1], params["pool1_assign"][1]], axis=1)
    wp2 = jnp.concatenate([params["pool2_embed"][0], params["pool2_assign"][0]], axis=1)
    bp2 = jnp.concatenate([params["pool2_embed"][1], params["pool2_assign"][1]], axis=1)

    args = (
        x, adj, mask3,
        *params["sage1"], *params["sage2"],
        wp1, bp1,
        *params["sage3"],
        wp2, bp2,
    )

    return pl.pallas_call(
        fused_forward_kernel,
        out_shape=jax.ShapeDtypeStruct((B, H), jnp.float32),
        # no grid / BlockSpecs: full (tiny) arrays are DMA'd to VMEM once and the
        # whole batch is processed in a single kernel invocation.
        compiler_params=pltpu.CompilerParams(vmem_limit_bytes=16 << 20),
    )(*args)


# ----------------------------------------------------------------------------
# Parameter init (deterministic, xavier-uniform-ish like the PyTorch module)
# ----------------------------------------------------------------------------
def _linear_params(key, fan_in, fan_out):
    kw, kb = jax.random.split(key)
    gain = jnp.sqrt(2.0)  # relu gain, as in nn.init.xavier_uniform_(..., gain='relu')
    bound = gain * jnp.sqrt(6.0 / (fan_in + fan_out))
    w = jax.random.uniform(kw, (fan_in, fan_out), jnp.float32, -bound, bound)
    b_bound = 1.0 / jnp.sqrt(fan_in)
    b = jax.random.uniform(kb, (1, fan_out), jnp.float32, -b_bound, b_bound)
    return w, b


def init_model_params(key, input_shape, hidden=30, pool1=8, pool2=4):
    ks = jax.random.split(key, 7)
    return {
        "sage1": _linear_params(ks[0], input_shape, hidden),
        "sage2": _linear_params(ks[1], hidden, hidden),
        "pool1_embed": _linear_params(ks[2], hidden, hidden),
        "pool1_assign": _linear_params(ks[3], hidden, pool1),
        "sage3": _linear_params(ks[4], hidden, hidden),
        "pool2_embed": _linear_params(ks[5], hidden, hidden),
        "pool2_assign": _linear_params(ks[6], hidden, pool2),
    }


# ----------------------------------------------------------------------------
# Pure-JAX reference (for correctness check)
# ----------------------------------------------------------------------------
def _ref_sage(x, adj, mask3, w, b):
    h = jnp.einsum("bnm,bmf->bnf", adj, x) @ w + b
    h = h / jnp.maximum(jnp.linalg.norm(h, axis=-1, keepdims=True), 1e-12)
    h = jnp.maximum(h, 0.0)
    return h * mask3


def _ref_pool(x, adj, we, be, wa, ba):
    ones = jnp.ones((x.shape[0], x.shape[1], 1), jnp.float32)
    z = _ref_sage(x, adj, ones, we, be)
    s = _ref_sage(x, adj, ones, wa, ba)
    s = jax.nn.softmax(s, axis=-1)
    xn = jnp.einsum("bnp,bnh->bph", s, z)
    an = jnp.einsum("bnp,bnm,bmq->bpq", s, adj, s)
    return xn, an


def reference_forward(params, x, adj, mask):
    mask3 = mask[:, :, None].astype(jnp.float32)
    x = _ref_sage(x, adj, mask3, *params["sage1"])
    x = _ref_sage(x, adj, mask3, *params["sage2"])
    x, adj = _ref_pool(x, adj, *params["pool1_embed"], *params["pool1_assign"])
    ones = jnp.ones((x.shape[0], x.shape[1], 1), jnp.float32)
    x = _ref_sage(x, adj, ones, *params["sage3"])
    x, adj = _ref_pool(x, adj, *params["pool2_embed"], *params["pool2_assign"])
    return x.sum(axis=1)


# ----------------------------------------------------------------------------
if __name__ == "__main__":
    B, N, F_IN = 2, 16, 16
    HIDDEN, POOL1, POOL2 = 30, 8, 4

    key = jax.random.PRNGKey(0)
    k_x, k_adj, k_mask, k_params = jax.random.split(key, 4)

    x = jax.random.normal(k_x, (B, N, F_IN), jnp.float32)
    adj_rand = (jax.random.uniform(k_adj, (B, N, N)) < 0.3).astype(jnp.float32)
    adj = jnp.clip(adj_rand + jnp.transpose(adj_rand, (0, 2, 1)), 0.0, 1.0)
    # simple node mask: first 12 nodes valid in graph 0, all 16 in graph 1
    mask = jnp.stack([
        (jnp.arange(N) < 12).astype(jnp.float32),
        (jnp.arange(N) < 16).astype(jnp.float32),
    ])

    params = init_model_params(k_params, F_IN, HIDDEN, POOL1, POOL2)

    out = jax.block_until_ready(batched_model_forward(params, x, adj, mask))
    ref = jax.block_until_ready(reference_forward(params, x, adj, mask))

    assert out.shape == (B, HIDDEN), out.shape
    assert jnp.allclose(out, ref, atol=1e-4, rtol=1e-4), float(jnp.abs(out - ref).max())
    print("KERNEL_OK")
</pallas_src>

<mosaic_0001>
module attributes {stable_mosaic.version = 11 : i64} {
  func.func @fused_forward_kernel(%arg0: memref<2x16x16xf32, #tpu.memory_space<vmem>>, %arg1: memref<2x16x16xf32, #tpu.memory_space<vmem>>, %arg2: memref<2x16x1xf32, #tpu.memory_space<vmem>>, %arg3: memref<16x30xf32, #tpu.memory_space<vmem>>, %arg4: memref<1x30xf32, #tpu.memory_space<vmem>>, %arg5: memref<30x30xf32, #tpu.memory_space<vmem>>, %arg6: memref<1x30xf32, #tpu.memory_space<vmem>>, %arg7: memref<30x38xf32, #tpu.memory_space<vmem>>, %arg8: memref<1x38xf32, #tpu.memory_space<vmem>>, %arg9: memref<30x30xf32, #tpu.memory_space<vmem>>, %arg10: memref<1x30xf32, #tpu.memory_space<vmem>>, %arg11: memref<30x34xf32, #tpu.memory_space<vmem>>, %arg12: memref<1x34xf32, #tpu.memory_space<vmem>>, %arg13: memref<2x30xf32, #tpu.memory_space<vmem>>) attributes {dimension_semantics = [], scalar_prefetch = 0 : i64, scratch_operands = 0 : i64, tpu.core_type = #tpu.core_type<tc>} {
    %c0 = arith.constant 0 : index
    %c0_0 = arith.constant 0 : index
    %c0_1 = arith.constant 0 : index
    %0 = vector.load %arg0[%c0, %c0_0, %c0_1] : memref<2x16x16xf32, #tpu.memory_space<vmem>>, vector<2x16x16xf32>
    %c0_2 = arith.constant 0 : index
    %c0_3 = arith.constant 0 : index
    %c0_4 = arith.constant 0 : index
    %1 = vector.load %arg1[%c0_2, %c0_3, %c0_4] : memref<2x16x16xf32, #tpu.memory_space<vmem>>, vector<2x16x16xf32>
    %c0_5 = arith.constant 0 : index
    %c0_6 = arith.constant 0 : index
    %c0_7 = arith.constant 0 : index
    %2 = vector.load %arg2[%c0_5, %c0_6, %c0_7] : memref<2x16x1xf32, #tpu.memory_space<vmem>>, vector<2x16x1xf32>
    "tpu.trace_start"() <{level = 10 : i32, message = "bnm,bmf->bnf"}> : () -> ()
    %cst = arith.constant dense<0.000000e+00> : vector<2x16x16xf32>
    %3 = tpu.matmul %1, %0, %cst {dimension_numbers = #tpu.dot_dimension_numbers<[2], [1], [1], [2], [0, 0, 0, 1, 1, 2], [0], [0]>} : vector<2x16x16xf32>, vector<2x16x16xf32>, vector<2x16x16xf32> -> vector<2x16x16xf32>
    "tpu.trace_stop"() : () -> ()
    %4 = vector.shape_cast %3 : vector<2x16x16xf32> to vector<32x16xf32>
    %c0_8 = arith.constant 0 : index
    %c0_9 = arith.constant 0 : index
    %5 = vector.load %arg3[%c0_8, %c0_9] : memref<16x30xf32, #tpu.memory_space<vmem>>, vector<16x30xf32>
    %cst_10 = arith.constant dense<0.000000e+00> : vector<32x30xf32>
    %6 = tpu.matmul %4, %5, %cst_10 {dimension_numbers = #tpu.dot_dimension_numbers<[1], [0], [0], [1], [0, 0, 1, 1], [], []>} : vector<32x16xf32>, vector<16x30xf32>, vector<32x30xf32> -> vector<32x30xf32>
    %c0_11 = arith.constant 0 : index
    %c0_12 = arith.constant 0 : index
    %7 = vector.load %arg4[%c0_11, %c0_12] : memref<1x30xf32, #tpu.memory_space<vmem>>, vector<1x30xf32>
    %8 = vector.broadcast %7 : vector<1x30xf32> to vector<32x30xf32>
    %9 = arith.addf %6, %8 : vector<32x30xf32>
    %10 = arith.mulf %9, %9 : vector<32x30xf32>
    %cst_13 = arith.constant dense<0.000000e+00> : vector<32xf32>
    %11 = vector.multi_reduction <add>, %10, %cst_13 [1] : vector<32x30xf32> to vector<32xf32>
    %12 = vector.shape_cast %11 : vector<32xf32> to vector<32x1xf32>
    %13 = math.sqrt %12 : vector<32x1xf32>
    %cst_14 = arith.constant 9.99999996E-13 : f32
    %14 = vector.broadcast %cst_14 : f32 to vector<32x1xf32>
    %15 = arith.maximumf %13, %14 : vector<32x1xf32>
    %16 = vector.broadcast %15 : vector<32x1xf32> to vector<32x30xf32>
    %17 = arith.divf %9, %16 : vector<32x30xf32>
    %cst_15 = arith.constant 0.000000e+00 : f32
    %18 = vector.broadcast %cst_15 : f32 to vector<32x30xf32>
    %19 = arith.maximumf %17, %18 : vector<32x30xf32>
    %20 = vector.shape_cast %19 : vector<32x30xf32> to vector<2x16x30xf32>
    %21 = vector.broadcast %2 : vector<2x16x1xf32> to vector<2x16x30xf32>
    %22 = arith.mulf %20, %21 : vector<2x16x30xf32>
    "tpu.trace_start"() <{level = 10 : i32, message = "bnm,bmf->bnf"}> : () -> ()
    %cst_16 = arith.constant dense<0.000000e+00> : vector<2x16x30xf32>
    %23 = tpu.matmul %1, %22, %cst_16 {dimension_numbers = #tpu.dot_dimension_numbers<[2], [1], [1], [2], [0, 0, 0, 1, 1, 2], [0], [0]>} : vector<2x16x16xf32>, vector<2x16x30xf32>, vector<2x16x30xf32> -> vector<2x16x30xf32>
    "tpu.trace_stop"() : () -> ()
    %24 = vector.shape_cast %23 : vector<2x16x30xf32> to vector<32x30xf32>
    %c0_17 = arith.constant 0 : index
    %c0_18 = arith.constant 0 : index
    %25 = vector.load %arg5[%c0_17, %c0_18] : memref<30x30xf32, #tpu.memory_space<vmem>>, vector<30x30xf32>
    %cst_19 = arith.constant dense<0.000000e+00> : vector<32x30xf32>
    %26 = tpu.matmul %24, %25, %cst_19 {dimension_numbers = #tpu.dot_dimension_numbers<[1], [0], [0], [1], [0, 0, 1, 1], [], []>} : vector<32x30xf32>, vector<30x30xf32>, vector<32x30xf32> -> vector<32x30xf32>
    %c0_20 = arith.constant 0 : index
    %c0_21 = arith.constant 0 : index
    %27 = vector.load %arg6[%c0_20, %c0_21] : memref<1x30xf32, #tpu.memory_space<vmem>>, vector<1x30xf32>
    %28 = vector.broadcast %27 : vector<1x30xf32> to vector<32x30xf32>
    %29 = arith.addf %26, %28 : vector<32x30xf32>
    %30 = arith.mulf %29, %29 : vector<32x30xf32>
    %cst_22 = arith.constant dense<0.000000e+00> : vector<32xf32>
    %31 = vector.multi_reduction <add>, %30, %cst_22 [1] : vector<32x30xf32> to vector<32xf32>
    %32 = vector.shape_cast %31 : vector<32xf32> to vector<32x1xf32>
    %33 = math.sqrt %32 : vector<32x1xf32>
    %cst_23 = arith.constant 9.99999996E-13 : f32
    %34 = vector.broadcast %cst_23 : f32 to vector<32x1xf32>
    %35 = arith.maximumf %33, %34 : vector<32x1xf32>
    %36 = vector.broadcast %35 : vector<32x1xf32> to vector<32x30xf32>
    %37 = arith.divf %29, %36 : vector<32x30xf32>
    %cst_24 = arith.constant 0.000000e+00 : f32
    %38 = vector.broadcast %cst_24 : f32 to vector<32x30xf32>
    %39 = arith.maximumf %37, %38 : vector<32x30xf32>
    %40 = vector.shape_cast %39 : vector<32x30xf32> to vector<2x16x30xf32>
    %41 = vector.broadcast %2 : vector<2x16x1xf32> to vector<2x16x30xf32>
    %42 = arith.mulf %40, %41 : vector<2x16x30xf32>
    "tpu.trace_start"() <{level = 10 : i32, message = "bnm,bmf->bnf"}> : () -> ()
    %cst_25 = arith.constant dense<0.000000e+00> : vector<2x16x30xf32>
    %43 = tpu.matmul %1, %42, %cst_25 {dimension_numbers = #tpu.dot_dimension_numbers<[2], [1], [1], [2], [0, 0, 0, 1, 1, 2], [0], [0]>} : vector<2x16x16xf32>, vector<2x16x30xf32>, vector<2x16x30xf32> -> vector<2x16x30xf32>
    "tpu.trace_stop"() : () -> ()
    %44 = vector.shape_cast %43 : vector<2x16x30xf32> to vector<32x30xf32>
    %c0_26 = arith.constant 0 : index
    %c0_27 = arith.constant 0 : index
    %45 = vector.load %arg7[%c0_26, %c0_27] : memref<30x38xf32, #tpu.memory_space<vmem>>, vector<30x38xf32>
    %cst_28 = arith.constant dense<0.000000e+00> : vector<32x38xf32>
    %46 = tpu.matmul %44, %45, %cst_28 {dimension_numbers = #tpu.dot_dimension_numbers<[1], [0], [0], [1], [0, 0, 1, 1], [], []>} : vector<32x30xf32>, vector<30x38xf32>, vector<32x38xf32> -> vector<32x38xf32>
    %c0_29 = arith.constant 0 : index
    %c0_30 = arith.constant 0 : index
    %47 = vector.load %arg8[%c0_29, %c0_30] : memref<1x38xf32, #tpu.memory_space<vmem>>, vector<1x38xf32>
    %48 = vector.broadcast %47 : vector<1x38xf32> to vector<32x38xf32>
    %49 = arith.addf %46, %48 : vector<32x38xf32>
    %50 = vector.extract_strided_slice %49 {offsets = [0, 0], sizes = [32, 30], strides = [1, 1]} : vector<32x38xf32> to vector<32x30xf32>
    %51 = vector.extract_strided_slice %49 {offsets = [0, 30], sizes = [32, 8], strides = [1, 1]} : vector<32x38xf32> to vector<32x8xf32>
    %52 = arith.mulf %50, %50 : vector<32x30xf32>
    %cst_31 = arith.constant dense<0.000000e+00> : vector<32xf32>
    %53 = vector.multi_reduction <add>, %52, %cst_31 [1] : vector<32x30xf32> to vector<32xf32>
    %54 = vector.shape_cast %53 : vector<32xf32> to vector<32x1xf32>
    %55 = math.sqrt %54 : vector<32x1xf32>
    %cst_32 = arith.constant 9.99999996E-13 : f32
    %56 = vector.broadcast %cst_32 : f32 to vector<32x1xf32>
    %57 = arith.maximumf %55, %56 : vector<32x1xf32>
    %58 = vector.broadcast %57 : vector<32x1xf32> to vector<32x30xf32>
    %59 = arith.divf %50, %58 : vector<32x30xf32>
    %cst_33 = arith.constant 0.000000e+00 : f32
    %60 = vector.broadcast %cst_33 : f32 to vector<32x30xf32>
    %61 = arith.maximumf %59, %60 : vector<32x30xf32>
    %62 = vector.shape_cast %61 : vector<32x30xf32> to vector<2x16x30xf32>
    %63 = arith.mulf %51, %51 : vector<32x8xf32>
    %cst_34 = arith.constant dense<0.000000e+00> : vector<32xf32>
    %64 = vector.multi_reduction <add>, %63, %cst_34 [1] : vector<32x8xf32> to vector<32xf32>
    %65 = vector.shape_cast %64 : vector<32xf32> to vector<32x1xf32>
    %66 = math.sqrt %65 : vector<32x1xf32>
    %cst_35 = arith.constant 9.99999996E-13 : f32
    %67 = vector.broadcast %cst_35 : f32 to vector<32x1xf32>
    %68 = arith.maximumf %66, %67 : vector<32x1xf32>
    %69 = vector.broadcast %68 : vector<32x1xf32> to vector<32x8xf32>
    %70 = arith.divf %51, %69 : vector<32x8xf32>
    %cst_36 = arith.constant 0.000000e+00 : f32
    %71 = vector.broadcast %cst_36 : f32 to vector<32x8xf32>
    %72 = arith.maximumf %70, %71 : vector<32x8xf32>
    %73 = vector.shape_cast %72 : vector<32x8xf32> to vector<2x16x8xf32>
    %cst_37 = arith.constant dense<0xFF800000> : vector<2x16xf32>
    %74 = vector.multi_reduction <maximumf>, %73, %cst_37 [2] : vector<2x16x8xf32> to vector<2x16xf32>
    %75 = vector.shape_cast %74 : vector<2x16xf32> to vector<2x16x1xf32>
    %76 = vector.broadcast %75 : vector<2x16x1xf32> to vector<2x16x8xf32>
    %77 = arith.subf %73, %76 : vector<2x16x8xf32>
    %78 = math.exp %77 : vector<2x16x8xf32>
    %cst_38 = arith.constant dense<0.000000e+00> : vector<2x16xf32>
    %79 = vector.multi_reduction <add>, %78, %cst_38 [2] : vector<2x16x8xf32> to vector<2x16xf32>
    %80 = vector.shape_cast %79 : vector<2x16xf32> to vector<2x16x1xf32>
    %81 = vector.broadcast %80 : vector<2x16x1xf32> to vector<2x16x8xf32>
    %82 = arith.divf %78, %81 : vector<2x16x8xf32>
    "tpu.trace_start"() <{level = 10 : i32, message = "bnp,bnh->bph"}> : () -> ()
    %cst_39 = arith.constant dense<0.000000e+00> : vector<2x8x30xf32>
    %83 = tpu.matmul %82, %62, %cst_39 {dimension_numbers = #tpu.dot_dimension_numbers<[1], [1], [2], [2], [0, 0, 0, 2, 1, 2], [0], [0]>} : vector<2x16x8xf32>, vector<2x16x30xf32>, vector<2x8x30xf32> -> vector<2x8x30xf32>
    "tpu.trace_stop"() : () -> ()
    "tpu.trace_start"() <{level = 10 : i32, message = "bnp,bnm->bpm"}> : () -> ()
    %cst_40 = arith.constant dense<0.000000e+00> : vector<2x8x16xf32>
    %84 = tpu.matmul %82, %1, %cst_40 {dimension_numbers = #tpu.dot_dimension_numbers<[1], [1], [2], [2], [0, 0, 0, 2, 1, 2], [0], [0]>} : vector<2x16x8xf32>, vector<2x16x16xf32>, vector<2x8x16xf32> -> vector<2x8x16xf32>
    "tpu.trace_stop"() : () -> ()
    "tpu.trace_start"() <{level = 10 : i32, message = "bpm,bmq->bpq"}> : () -> ()
    %cst_41 = arith.constant dense<0.000000e+00> : vector<2x8x8xf32>
    %85 = tpu.matmul %84, %82, %cst_41 {dimension_numbers = #tpu.dot_dimension_numbers<[2], [1], [1], [2], [0, 0, 0, 1, 1, 2], [0], [0]>} : vector<2x8x16xf32>, vector<2x16x8xf32>, vector<2x8x8xf32> -> vector<2x8x8xf32>
    "tpu.trace_stop"() : () -> ()
    "tpu.trace_start"() <{level = 10 : i32, message = "bnm,bmf->bnf"}> : () -> ()
    %cst_42 = arith.constant dense<0.000000e+00> : vector<2x8x30xf32>
    %86 = tpu.matmul %85, %83, %cst_42 {dimension_numbers = #tpu.dot_dimension_numbers<[2], [1], [1], [2], [0, 0, 0, 1, 1, 2], [0], [0]>} : vector<2x8x8xf32>, vector<2x8x30xf32>, vector<2x8x30xf32> -> vector<2x8x30xf32>
    "tpu.trace_stop"() : () -> ()
    %87 = vector.shape_cast %86 : vector<2x8x30xf32> to vector<16x30xf32>
    %c0_43 = arith.constant 0 : index
    %c0_44 = arith.constant 0 : index
    %88 = vector.load %arg9[%c0_43, %c0_44] : memref<30x30xf32, #tpu.memory_space<vmem>>, vector<30x30xf32>
    %cst_45 = arith.constant dense<0.000000e+00> : vector<16x30xf32>
    %89 = tpu.matmul %87, %88, %cst_45 {dimension_numbers = #tpu.dot_dimension_numbers<[1], [0], [0], [1], [0, 0, 1, 1], [], []>} : vector<16x30xf32>, vector<30x30xf32>, vector<16x30xf32> -> vector<16x30xf32>
    %c0_46 = arith.constant 0 : index
    %c0_47 = arith.constant 0 : index
    %90 = vector.load %arg10[%c0_46, %c0_47] : memref<1x30xf32, #tpu.memory_space<vmem>>, vector<1x30xf32>
    %91 = vector.broadcast %90 : vector<1x30xf32> to vector<16x30xf32>
    %92 = arith.addf %89, %91 : vector<16x30xf32>
    %93 = arith.mulf %92, %92 : vector<16x30xf32>
    %cst_48 = arith.constant dense<0.000000e+00> : vector<16xf32>
    %94 = vector.multi_reduction <add>, %93, %cst_48 [1] : vector<16x30xf32> to vector<16xf32>
    %95 = vector.shape_cast %94 : vector<16xf32> to vector<16x1xf32>
    %96 = math.sqrt %95 : vector<16x1xf32>
    %cst_49 = arith.constant 9.99999996E-13 : f32
    %97 = vector.broadcast %cst_49 : f32 to vector<16x1xf32>
    %98 = arith.maximumf %96, %97 : vector<16x1xf32>
    %99 = vector.broadcast %98 : vector<16x1xf32> to vector<16x30xf32>
    %100 = arith.divf %92, %99 : vector<16x30xf32>
    %cst_50 = arith.constant 0.000000e+00 : f32
    %101 = vector.broadcast %cst_50 : f32 to vector<16x30xf32>
    %102 = arith.maximumf %100, %101 : vector<16x30xf32>
    %103 = vector.shape_cast %102 : vector<16x30xf32> to vector<2x8x30xf32>
    "tpu.trace_start"() <{level = 10 : i32, message = "bnm,bmf->bnf"}> : () -> ()
    %cst_51 = arith.constant dense<0.000000e+00> : vector<2x8x30xf32>
    %104 = tpu.matmul %85, %103, %cst_51 {dimension_numbers = #tpu.dot_dimension_numbers<[2], [1], [1], [2], [0, 0, 0, 1, 1, 2], [0], [0]>} : vector<2x8x8xf32>, vector<2x8x30xf32>, vector<2x8x30xf32> -> vector<2x8x30xf32>
    "tpu.trace_stop"() : () -> ()
    %105 = vector.shape_cast %104 : vector<2x8x30xf32> to vector<16x30xf32>
    %c0_52 = arith.constant 0 : index
    %c0_53 = arith.constant 0 : index
    %106 = vector.load %arg11[%c0_52, %c0_53] : memref<30x34xf32, #tpu.memory_space<vmem>>, vector<30x34xf32>
    %cst_54 = arith.constant dense<0.000000e+00> : vector<16x34xf32>
    %107 = tpu.matmul %105, %106, %cst_54 {dimension_numbers = #tpu.dot_dimension_numbers<[1], [0], [0], [1], [0, 0, 1, 1], [], []>} : vector<16x30xf32>, vector<30x34xf32>, vector<16x34xf32> -> vector<16x34xf32>
    %c0_55 = arith.constant 0 : index
    %c0_56 = arith.constant 0 : index
    %108 = vector.load %arg12[%c0_55, %c0_56] : memref<1x34xf32, #tpu.memory_space<vmem>>, vector<1x34xf32>
    %109 = vector.broadcast %108 : vector<1x34xf32> to vector<16x34xf32>
    %110 = arith.addf %107, %109 : vector<16x34xf32>
    %111 = vector.extract_strided_slice %110 {offsets = [0, 0], sizes = [16, 30], strides = [1, 1]} : vector<16x34xf32> to vector<16x30xf32>
    %112 = vector.extract_strided_slice %110 {offsets = [0, 30], sizes = [16, 4], strides = [1, 1]} : vector<16x34xf32> to vector<16x4xf32>
    %113 = arith.mulf %111, %111 : vector<16x30xf32>
    %cst_57 = arith.constant dense<0.000000e+00> : vector<16xf32>
    %114 = vector.multi_reduction <add>, %113, %cst_57 [1] : vector<16x30xf32> to vector<16xf32>
    %115 = vector.shape_cast %114 : vector<16xf32> to vector<16x1xf32>
    %116 = math.sqrt %115 : vector<16x1xf32>
    %cst_58 = arith.constant 9.99999996E-13 : f32
    %117 = vector.broadcast %cst_58 : f32 to vector<16x1xf32>
    %118 = arith.maximumf %116, %117 : vector<16x1xf32>
    %119 = vector.broadcast %118 : vector<16x1xf32> to vector<16x30xf32>
    %120 = arith.divf %111, %119 : vector<16x30xf32>
    %cst_59 = arith.constant 0.000000e+00 : f32
    %121 = vector.broadcast %cst_59 : f32 to vector<16x30xf32>
    %122 = arith.maximumf %120, %121 : vector<16x30xf32>
    %123 = vector.shape_cast %122 : vector<16x30xf32> to vector<2x8x30xf32>
    %124 = arith.mulf %112, %112 : vector<16x4xf32>
    %cst_60 = arith.constant dense<0.000000e+00> : vector<16xf32>
    %125 = vector.multi_reduction <add>, %124, %cst_60 [1] : vector<16x4xf32> to vector<16xf32>
    %126 = vector.shape_cast %125 : vector<16xf32> to vector<16x1xf32>
    %127 = math.sqrt %126 : vector<16x1xf32>
    %cst_61 = arith.constant 9.99999996E-13 : f32
    %128 = vector.broadcast %cst_61 : f32 to vector<16x1xf32>
    %129 = arith.maximumf %127, %128 : vector<16x1xf32>
    %130 = vector.broadcast %129 : vector<16x1xf32> to vector<16x4xf32>
    %131 = arith.divf %112, %130 : vector<16x4xf32>
    %cst_62 = arith.constant 0.000000e+00 : f32
    %132 = vector.broadcast %cst_62 : f32 to vector<16x4xf32>
    %133 = arith.maximumf %131, %132 : vector<16x4xf32>
    %134 = vector.shape_cast %133 : vector<16x4xf32> to vector<2x8x4xf32>
    %cst_63 = arith.constant dense<0xFF800000> : vector<2x8xf32>
    %135 = vector.multi_reduction <maximumf>, %134, %cst_63 [2] : vector<2x8x4xf32> to vector<2x8xf32>
    %136 = vector.shape_cast %135 : vector<2x8xf32> to vector<2x8x1xf32>
    %137 = vector.broadcast %136 : vector<2x8x1xf32> to vector<2x8x4xf32>
    %138 = arith.subf %134, %137 : vector<2x8x4xf32>
    %139 = math.exp %138 : vector<2x8x4xf32>
    %cst_64 = arith.constant dense<0.000000e+00> : vector<2x8xf32>
    %140 = vector.multi_reduction <add>, %139, %cst_64 [2] : vector<2x8x4xf32> to vector<2x8xf32>
    %141 = vector.shape_cast %140 : vector<2x8xf32> to vector<2x8x1xf32>
    %142 = vector.broadcast %141 : vector<2x8x1xf32> to vector<2x8x4xf32>
    %143 = arith.divf %139, %142 : vector<2x8x4xf32>
    "tpu.trace_start"() <{level = 10 : i32, message = "bnp,bnh->bph"}> : () -> ()
    %cst_65 = arith.constant dense<0.000000e+00> : vector<2x4x30xf32>
    %144 = tpu.matmul %143, %123, %cst_65 {dimension_numbers = #tpu.dot_dimension_numbers<[1], [1], [2], [2], [0, 0, 0, 2, 1, 2], [0], [0]>} : vector<2x8x4xf32>, vector<2x8x30xf32>, vector<2x4x30xf32> -> vector<2x4x30xf32>
    "tpu.trace_stop"() : () -> ()
    %cst_66 = arith.constant dense<0.000000e+00> : vector<2x30xf32>
    %145 = vector.multi_reduction <add>, %144, %cst_66 [1] : vector<2x4x30xf32> to vector<2x30xf32>
    %c0_67 = arith.constant 0 : index
    %c0_68 = arith.constant 0 : index
    %146 = vector.load %arg13[%c0_67, %c0_68] : memref<2x30xf32, #tpu.memory_space<vmem>>, vector<2x30xf32>
    tpu.vector_store %arg13[%c0_67, %c0_68], %145 {strides = array<i32>} : memref<2x30xf32, #tpu.memory_space<vmem>>, vector<2x30xf32>,
    return
  }
}

</mosaic_0001>

<bundles_post_ra>
// kernel: tpu_custom_call.1
= control target key start
LH: loop header
LB: loop body
LE: loop exit
PB: predicated region body
PF: predicated region fallthrough
CT: control target
= control target key end

     0   :  { %18 = vsyncpa [#allocation3], 0  ;;  %s3971_s0 = inlined_call_operand.vmem [shape: f32[2,16,16], index: 0, kind: input, shape index: {}]   ;;  %s3972_s1 = inlined_call_operand.hbm [shape: f32[2,16,16], index: 1, kind: input, shape index: {}]   ;;  %s3973_s2 = inlined_call_operand.vmem [shape: f32[2,16,1], index: 2, kind: input, shape index: {}]   ;;  %s3974_s3 = inlined_call_operand.hbm [shape: f32[16,30], index: 3, kind: input, shape index: {}]   ;;  %s3975_s4 = inlined_call_operand.hbm [shape: f32[1,30], index: 4, kind: input, shape index: {}]   ;;  %s3976_s5 = inlined_call_operand.hbm [shape: f32[30,30], index: 5, kind: input, shape index: {}]   ;;  %s3977_s6 = inlined_call_operand.hbm [shape: f32[1,30], index: 6, kind: input, shape index: {}]   ;;  %s3978_s7 = inlined_call_operand.hbm [shape: f32[30,38], index: 7, kind: input, shape index: {}]   ;;  %s3979_s8 = inlined_call_operand.hbm [shape: f32[1,38], index: 8, kind: input, shape index: {}]   ;;  %s3980_s9 = inlined_call_operand.vmem [shape: f32[30,30], index: 9, kind: input, shape index: {}]   ;;  %s3981_s10 = inlined_call_operand.vmem [shape: f32[1,30], index: 10, kind: input, shape index: {}]   ;;  %s3982_s11 = inlined_call_operand.hbm [shape: f32[30,34], index: 11, kind: input, shape index: {}]   ;;  %s3983_s12 = inlined_call_operand.vmem [shape: f32[1,34], index: 12, kind: input, shape index: {}]   ;;  %s3984_s13 = inlined_call_operand.hbm [shape: f32[2,30], index: 13, kind: output, shape index: {}]  }
   0x1   :  { %19 = vsyncpa [#allocation6], 0 }
   0x2   :  { %20 = vsyncpa [#allocation9], 0 }
   0x3   :  { %21 = vsyncpa [#allocation12], 0 }
   0x4   :  { %22 = vsyncpa [#allocation15], 0 }
   0x5   :  { %23 = vsyncpa [#allocation4], 0  ;;  %s3408_s25 = smov [#allocation5]   ;;  %s3409_s27 = smov [#allocation8]  }
   0x6   :  { %s45_s26 = sshll.u32 %s3408_s25, 4  ;;  %s67_s28 = sshll.u32 %s3409_s27, 4  ;;  %s46_s26 = int_to_ptr.vmem [resolvable:$true] %s45_s26  ;;  %s3495_s28 = int_to_ptr.vmem [resolvable:$true] %s67_s28 }
   0x7   :  { %s3198_s14 = scalar_lea.hbm %s3974_s3, 256 }
   0x8   :  { %p3199_p0 = scmp.ne.s32.totalorder %s3974_s3, %s3198_s14  ;;  %p3202_p1 = scmp.lt.u32.totalorder %s3198_s14, %s3974_s3 }
   0xa   :  { %p3204_p2 = pnand %p3202_p1, %p3199_p0 }
   0xc   :  { %3207 = shalt.err (!%p3204_p2)
}
   0xd   :  { %s3208_s19 = scalar_lea.vmem %s46_s26, 256  ;;  %p3213_p4 = scmp.lt.s32.totalorder %s46_s26, %s46_s26 }
   0xe   :  { %p3209_p3 = scmp.ne.s32.totalorder %s46_s26, %s3208_s19  ;;  %p3214_p5 = scmp.lt.s32.totalorder %s3208_s19, %s3208_s19 }
  0x10   :  { %p3215_p6 = por %p3214_p5, %p3213_p4 }
  0x12   :  { %p3216_p7 = pnand %p3215_p6, %p3209_p3 }
  0x14   :  { %3219 = shalt.err (!%p3216_p7)
}
  0x15   :  { %s3410_s20 = smov 128   ;;  %s3411_s21 = smov 8  }
  0x16   :  { %51 = dma.hbm_to_vmem [thread:$0]  %s3974_s3, 256, %s46_s26, [#allocation6], %s3410_s20, %s3410_s20, %s3411_s21  }
  0x17   :  { %s3220_s27 = scalar_lea.hbm %s3976_s5, 512 }
  0x18   :  { %p3221_p8 = scmp.ne.s32.totalorder %s3976_s5, %s3220_s27  ;;  %p3224_p9 = scmp.lt.u32.totalorder %s3220_s27, %s3976_s5 }
  0x1a   :  { %p3226_p10 = pnand %p3224_p9, %p3221_p8 }
  0x1c   :  { %3229 = shalt.err (!%p3226_p10)
}
  0x1d   :  { %s3230_s16 = scalar_lea.vmem %s3495_s28, 512  ;;  %p3235_p12 = scmp.lt.s32.totalorder %s3495_s28, %s3495_s28 }
  0x1e   :  { %p3231_p11 = scmp.ne.s32.totalorder %s3495_s28, %s3230_s16  ;;  %p3236_p13 = scmp.lt.s32.totalorder %s3230_s16, %s3230_s16 }
  0x20   :  { %p3237_p0 = por %p3236_p13, %p3235_p12 }
  0x22   :  { %p3238_p1 = pnand %p3237_p0, %p3231_p11 }
  0x24   :  { %3241 = shalt.err (!%p3238_p1)
}
  0x25   :  { %73 = dma.hbm_to_vmem [thread:$0]  %s3976_s5, 512, %s3495_s28, [#allocation9], %s3410_s20, %s3410_s20, %s3411_s21  }
  0x26   :  { %s3412_s17 = smov [#allocation11]   ;;  %s3413_s19 = smov [#allocation2]  }
  0x27   :  { %s89_s18 = sshll.u32 %s3412_s17, 4  ;;  %s31_s22 = sshll.u32 %s3413_s19, 4  ;;  %s90_s18 = int_to_ptr.vmem [resolvable:$true] %s89_s18  ;;  %s3532_s22 = int_to_ptr.vmem [resolvable:$true] %s31_s22 }
  0x28   :  { %s3242_s25 = scalar_lea.hbm %s3978_s7, 512 }
  0x29   :  { %p3243_p2 = scmp.ne.s32.totalorder %s3978_s7, %s3242_s25  ;;  %p3246_p3 = scmp.lt.u32.totalorder %s3242_s25, %s3978_s7 }
  0x2b   :  { %p3248_p4 = pnand %p3246_p3, %p3243_p2 }
  0x2d   :  { %3251 = shalt.err (!%p3248_p4)
}
  0x2e   :  { %s3252_s5 = scalar_lea.vmem %s90_s18, 512  ;;  %p3257_p6 = scmp.lt.s32.totalorder %s90_s18, %s90_s18 }
  0x2f   :  { %p3253_p5 = scmp.ne.s32.totalorder %s90_s18, %s3252_s5  ;;  %p3258_p7 = scmp.lt.s32.totalorder %s3252_s5, %s3252_s5 }
  0x31   :  { %p3259_p8 = por %p3258_p7, %p3257_p6 }
  0x33   :  { %p3260_p9 = pnand %p3259_p8, %p3253_p5 }
  0x35   :  { %3263 = shalt.err (!%p3260_p9)
}
  0x36   :  { %95 = dma.hbm_to_vmem [thread:$0]  %s3978_s7, 512, %s90_s18, [#allocation12], %s3410_s20, %s3410_s20, %s3411_s21  }
  0x37   :  { %s3264_s26 = scalar_lea.hbm %s3972_s1, 512 }
  0x38   :  { %p3265_p10 = scmp.ne.s32.totalorder %s3972_s1, %s3264_s26  ;;  %p3268_p11 = scmp.lt.u32.totalorder %s3264_s26, %s3972_s1 }
  0x3a   :  { %p3270_p12 = pnand %p3268_p11, %p3265_p10 }
  0x3c   :  { %3273 = shalt.err (!%p3270_p12)
}
  0x3d   :  { %s3274_s25 = scalar_lea.vmem %s3532_s22, 512  ;;  %p3279_p0 = scmp.lt.s32.totalorder %s3532_s22, %s3532_s22 }
  0x3e   :  { %p3275_p13 = scmp.ne.s32.totalorder %s3532_s22, %s3274_s25  ;;  %p3280_p1 = scmp.lt.s32.totalorder %s3274_s25, %s3274_s25 }
  0x40   :  { %p3281_p2 = por %p3280_p1, %p3279_p0 }
  0x42   :  { %p3282_p3 = pnand %p3281_p2, %p3275_p13 }
  0x44   :  { %3285 = shalt.err (!%p3282_p3)
}
  0x45   :  { %37 = dma.hbm_to_vmem [thread:$0]  %s3972_s1, 512, %s3532_s22, [#allocation3], %s3410_s20, %s3410_s20, %s3411_s21  }
  0x46   :  { %s3414_s27 = smov [#allocation7]   ;;  %s3415_s30 = smov [#allocation10]  }
  0x47   :  { %s58_s29 = sshll.u32 %s3414_s27, 4  ;;  %s80_s14 = sshll.u32 %s3415_s30, 4  ;;  %s59_s29 = int_to_ptr.vmem [resolvable:$true] %s58_s29  ;;  %s81_s14 = int_to_ptr.vmem [resolvable:$true] %s80_s14 }
  0x48   :  { %s3286_s15 = scalar_lea.hbm %s3975_s4, 16 }
  0x49   :  { %p3287_p4 = scmp.ne.s32.totalorder %s3975_s4, %s3286_s15  ;;  %p3290_p5 = scmp.lt.u32.totalorder %s3286_s15, %s3975_s4 }
  0x4b   :  { %p3292_p6 = pnand %p3290_p5, %p3287_p4 }
  0x4d   :  { %3295 = shalt.err (!%p3292_p6)
}
  0x4e   :  { %s3296_s1 = scalar_lea.vmem %s59_s29, 16  ;;  %s3300_s22 = scalar_lea.vmem %s59_s29, 32 }
  0x4f   :  { %p3297_p7 = scmp.ne.s32.totalorder %s59_s29, %s3296_s1  ;;  %p3301_p8 = scmp.lt.s32.totalorder %s59_s29, %s59_s29 }
  0x50   :  { %p3302_p9 = scmp.lt.s32.totalorder %s3300_s22, %s3296_s1 }
  0x52   :  { %p3303_p10 = por %p3302_p9, %p3301_p8 }
  0x54   :  { %p3304_p11 = pnand %p3303_p10, %p3297_p7 }
  0x56   :  { %3307 = shalt.err (!%p3304_p11)
}
  0x57   :  { %61 = dma.hbm_to_vmem [thread:$0]  %s3975_s4, 16, %s59_s29, [#allocation6]  }
  0x58   :  { %s3308_s7 = scalar_lea.hbm %s3977_s6, 16 }
  0x59   :  { %p3309_p12 = scmp.ne.s32.totalorder %s3977_s6, %s3308_s7  ;;  %p3312_p13 = scmp.lt.u32.totalorder %s3308_s7, %s3977_s6 }
  0x5b   :  { %p3314_p0 = pnand %p3312_p13, %p3309_p12 }
  0x5d   :  { %3317 = shalt.err (!%p3314_p0)
}
  0x5e   :  { %s3318_s28 = scalar_lea.vmem %s81_s14, 16  ;;  %s3322_s15 = scalar_lea.vmem %s81_s14, 32 }
  0x5f   :  { %p3319_p1 = scmp.ne.s32.totalorder %s81_s14, %s3318_s28  ;;  %p3323_p2 = scmp.lt.s32.totalorder %s81_s14, %s81_s14 }
  0x60   :  { %p3324_p3 = scmp.lt.s32.totalorder %s3322_s15, %s3318_s28 }
  0x62   :  { %p3325_p4 = por %p3324_p3, %p3323_p2 }
  0x64   :  { %p3326_p5 = pnand %p3325_p4, %p3319_p1 }
  0x66   :  { %3329 = shalt.err (!%p3326_p5)
}
  0x67   :  { %83 = dma.hbm_to_vmem [thread:$0]  %s3977_s6, 16, %s81_s14, [#allocation9]  }
  0x68   :  { %s3416_s16 = smov [#allocation13]   ;;  %s3417_s26 = smov [#allocation14]  }
  0x69   :  { %s102_s3 = sshll.u32 %s3416_s16, 4  ;;  %s115_s17 = sshll.u32 %s3417_s26, 4  ;;  %s103_s3 = int_to_ptr.vmem [resolvable:$true] %s102_s3  ;;  %s3593_s17 = int_to_ptr.vmem [resolvable:$true] %s115_s17 }
  0x6a   :  { %s3330_s19 = scalar_lea.hbm %s3979_s8, 16 }
  0x6b   :  { %p3331_p6 = scmp.ne.s32.totalorder %s3979_s8, %s3330_s19  ;;  %p3334_p7 = scmp.lt.u32.totalorder %s3330_s19, %s3979_s8 }
  0x6d   :  { %p3336_p8 = pnand %p3334_p7, %p3331_p6 }
  0x6f   :  { %3339 = shalt.err (!%p3336_p8)
}
  0x70   :  { %s3340_s6 = scalar_lea.vmem %s103_s3, 16  ;;  %s3344_s14 = scalar_lea.vmem %s103_s3, 32 }
  0x71   :  { %p3341_p9 = scmp.ne.s32.totalorder %s103_s3, %s3340_s6  ;;  %p3345_p10 = scmp.lt.s32.totalorder %s103_s3, %s103_s3 }
  0x72   :  { %p3346_p11 = scmp.lt.s32.totalorder %s3344_s14, %s3340_s6 }
  0x74   :  { %p3347_p12 = por %p3346_p11, %p3345_p10 }
  0x76   :  { %p3348_p13 = pnand %p3347_p12, %p3341_p9 }
  0x78   :  { %3351 = shalt.err (!%p3348_p13)
}
  0x79   :  { %105 = dma.hbm_to_vmem [thread:$0]  %s3979_s8, 16, %s103_s3, [#allocation12]  }
  0x7a   :  { %s3352_s28 = scalar_lea.hbm %s3982_s11, 512 }
  0x7b   :  { %p3353_p0 = scmp.ne.s32.totalorder %s3982_s11, %s3352_s28  ;;  %p3356_p1 = scmp.lt.u32.totalorder %s3352_s28, %s3982_s11 }
  0x7d   :  { %p3358_p2 = pnand %p3356_p1, %p3353_p0 }
  0x7f   :  { %3361 = shalt.err (!%p3358_p2)
}
  0x80   :  { %s3362_s26 = scalar_lea.vmem %s3593_s17, 512  ;;  %p3367_p4 = scmp.lt.s32.totalorder %s3593_s17, %s3593_s17 }
  0x81   :  { %p3363_p3 = scmp.ne.s32.totalorder %s3593_s17, %s3362_s26  ;;  %p3368_p5 = scmp.lt.s32.totalorder %s3362_s26, %s3362_s26 }
  0x83   :  { %p3369_p6 = por %p3368_p5, %p3367_p4 }
  0x85   :  { %p3370_p7 = pnand %p3369_p6, %p3363_p3 }
  0x87   :  { %3373 = shalt.err (!%p3370_p7)
}
  0x88   :  { %121 = dma.hbm_to_vmem [thread:$0]  %s3982_s11, 512, %s3593_s17, [#allocation15], %s3410_s20, %s3410_s20, %s3411_s21  }
  0x89   :  { %3396 = dma.done.wait [#allocation3], 512  }
  0x8a   :  { %3397 = vsyncadd [#allocation3], 4294966784 }
  0x8b   :  { %3398 = dma.done.wait [#allocation6], 272  }
  0x8c   :  { %3399 = vsyncadd [#allocation6], 4294967024 }
  0x8d   :  { %3400 = dma.done.wait [#allocation9], 528  }
  0x8e   :  { %3401 = vsyncadd [#allocation9], 4294966768 }
  0x8f   :  { %3402 = dma.done.wait [#allocation12], 528  }
  0x90   :  { %3403 = vsyncadd [#allocation12], 4294966768 }
  0x91   :  { %3404 = dma.done.wait [#allocation15], 512  }
  0x92   :  { %3405 = vsyncadd [#allocation15], 4294966784  ;;  %vm160_vm0 = vcmask 130048   ;;  %v148_v0 = vld [vmem:[%s3971_s0] sm:$0xff]  ;;  %v149_v1 = vld [vmem:[%s3971_s0 + $0x8] sm:$0xff]  ;;  %v3418_v14 = vmov 0  }
  0x93   :  { %v3633_v2 = vld [vmem:[#allocation2] sm:$0xff]  ;;  %v2981_v3 = vpack.c.bf16 %v149_v1, %v148_v0  ;;  %v150_v4 = vld [vmem:[%s3971_s0 + $0x10] sm:$0xff]  ;;  %v151_v5 = vld [vmem:[%s3971_s0 + $0x18] sm:$0xff]  ;;  %3085 = vset.pattern.permute.xlu1 %v3418_v14  ;;  %3084 = vset.pattern.permute.xlu0 %v3418_v14  ;;  %vm433_vm1 = vcmask 244736   ;;  %vm687_vm2 = vcmask 1045504   ;;  %vm3419_vm3 = vmmov 1  }
  0x94   :  { %2811 = vmatprep.mubr.msk.f32.mxu0 %vm160_vm0, %v3633_v2  ;;  %v2985_v6 = vpack.c.bf16 %v151_v5, %v150_v4  ;;  %v3643_v7 = vld [vmem:[#allocation2 + $0x10] sm:$0xff]  ;;  %v323_v8 = vld [vmem:[#allocation5] sm:$0xff]  ;;  %v324_v9 = vld [vmem:[#allocation5 + $0x8] sm:$0xff] }
  0x95   :  { %2982 = vmatprep.subr.bf16.mxu0 %v2981_v3  ;;  %2818 = vmatprep.mubr.msk.f32.mxu1 %vm160_vm0, %v3643_v7  ;;  %v3647_v10 = vld [vmem:[#allocation2 + $0x8] sm:$0xff]  ;;  %v2989_v11 = vpack.c.bf16 %v324_v9, %v323_v8  ;;  %v3649_v12 = vld [vmem:[#allocation2 + $0x18] sm:$0xff]  ;;  %v2674_v19 = vld [vmem:[#allocation7] ss:$0 sm:$0xff] }
  0x96   :  { %2984 = vmatpush3.bf16.msra.mxu0 %v2981_v3  ;;  %2986 = vmatprep.subr.bf16.mxu1 %v2985_v6  ;;  %v157_v13 = vld [vmem:[%s3973_s2 + $0x8] sm:$0xff]  ;;  %v158_v36 = vld [vmem:[%s3973_s2 + $0x10] sm:$0xff]  ;;  %v156_v37 = vld [vmem:[%s3973_s2] sm:$0xff] }
  0x97   :  { %2988 = vmatpush3.bf16.msra.mxu1 %v2985_v6  ;;  %2990 = vmatprep.subr.bf16.mxu0 %v2989_v11  ;;  %v159_v38 = vld [vmem:[%s3973_s2 + $0x18] sm:$0xff]  ;;  %v666_v41 = vld [vmem:[#allocation8 + $0x10] sm:$0xff]  ;;  %v667_v43 = vld [vmem:[#allocation8 + $0x18] sm:$0x3f]  ;;  %s3420_s2 = smov 98  }
  0x98   :  { %497 = vperm.xlu1 %3085, %v157_v13   ;;  %v664_v39 = vld [vmem:[#allocation8] sm:$0xff]  ;;  %v665_v40 = vld [vmem:[#allocation8 + $0x8] sm:$0xff]  ;;  %v3005_v44 = vpack.c.bf16 %v667_v43, %v666_v41  ;;  %vm3693_vm4 = vmpackc.low %vm687_vm2, %vm3419_vm3 }
  0x99   :  { %2812 = vmatmul.mubr.msk.f32.vlgmr.msra.gmra.mrb[0].mxu0 %vm160_vm0, %v3647_v10  ;;  %v3001_v42 = vpack.c.bf16 %v665_v40, %v664_v39  ;;  %v2683_v40 = vld [vmem:[#allocation10] ss:$0 sm:$0xff] }
  0x9a   :  { %2819 = vmatmul.mubr.msk.f32.vlgmr.msra.gmra.mrb[0].mxu1 %vm160_vm0, %v3649_v12  ;;  %2992 = vmatpush3.bf16.msra.mxu0 %v2989_v11 }
  0x9b   :  { %2835 = vmatprep.mubr.msk.f32.mxu1 %vm160_vm0, %v3633_v2  ;;  %3002 = vmatprep.subr.bf16.mxu0 %v3001_v42 }
 0x117   :  { %v3701_v46 = vpop.permute.xlu1 %497 }
 0x16c   :  { %v2813_v15 = vpop.f32.mrb[0].mxu0 }
 0x16d   :  { %v233_v16 = vpop.f32.mrb[1].mxu0  ;;  %v2820_v17 = vpop.f32.mrb[0].mxu1 }
 0x16e   :  { %2825 = vmatprep.mubr.msk.f32.mxu0 %vm160_vm0, %v233_v16  ;;  %v314_v18 = vpop.f32.mrb[1].mxu1 }
 0x16f   :  { %2826 = vmatmul.mubr.msk.f32.vlgmr.msra.gmra.mrb[2].mxu0 %vm160_vm0, %v2813_v15 }
 0x170   :  { %2828 = vmatprep.mubr.msk.f32.mxu0 %vm160_vm0, %v314_v18  ;;  %3004 = vmatpush3.bf16.msra.mxu0 %v3001_v42 }
 0x171   :  { %3007 = vmatprep.subr.msk.bf16.mxu0 %vm3693_vm4, %v3005_v44 }
 0x173   :  { %2829 = vmatmul.mubr.msk.f32.gmra.mrb[4].mxu0 %vm160_vm0, %v2820_v17 }
 0x174   :  { %3010 = vmatpush3.bf16.msk.msra.mxu0 %vm3693_vm4, %v3005_v44 }
 0x242   :  { %v2827_v20 = vpop.f32.mrb[2].mxu0 }
 0x243   :  { %v410_v21 = vpop.f32.mrb[3].mxu0  ;;  %v3664_v22 = vadd.f32 %v2827_v20, %v2674_v19 }
 0x244   :  { %v3666_v23 = vadd.f32 %v2674_v19, %v410_v21 }
 0x245   :  { %v430_v30 = vmul.f32 %v3664_v22, %v3664_v22 }
 0x246   :  { %v2830_v24 = vpop.f32.mrb[4].mxu0  ;;  %v429_v25 = vmul.f32 %v3666_v23, %v3666_v23 }
 0x247   :  { %v3670_v26 = vadd.f32 %v2830_v24, %v2674_v19  ;;  %v420_v27 = vpop.f32.mrb[5].mxu0  ;;  %v437_v34 = vsel %vm433_vm1, %v430_v30, 0.0 }
 0x248   :  { %v3672_v28 = vadd.f32 %v2674_v19, %v420_v27  ;;  %v434_v29 = vsel %vm433_vm1, %v429_v25, 0.0 }
 0x249   :  { %435 = vadd.xlane.f32.xlu0 %v434_v29  ;;  %v432_v31 = vmul.f32 %v3670_v26, %v3670_v26 }
 0x24a   :  { %v431_v33 = vmul.f32 %v3672_v28, %v3672_v28 }
 0x24b   :  { %v443_v32 = vsel %vm433_vm1, %v432_v31, 0.0 }
 0x24c   :  { %444 = vadd.xlane.f32.xlu1 %v443_v32  ;;  %v440_v35 = vsel %vm433_vm1, %v431_v33, 0.0 }
 0x24d   :  { %438 = vadd.xlane.f32.xlu0 %v437_v34 }
 0x250   :  { %441 = vadd.xlane.f32.xlu1 %v440_v35 }
 0x261   :  { %502 = vperm.xlu1 %3085, %v158_v36  }
 0x263   :  { %492 = vperm.xlu0 %3084, %v156_v37  }
 0x265   :  { %507 = vperm.xlu1 %3085, %v159_v38  }
 0x2d6   :  { %v436_v47 = vpop.xlane.xlu0 %435 }
 0x2d7   :  { %3086 = vrsqrt.f32 %v436_v47  ;;  %vm448_vm5 = vcmp.eq.f32.partialorder %v436_v47, inf  ;;  %v451_v53 = vand.u32 2147483648, %v436_v47  ;;  %vm450_vm6 = vcmp.eq.f32.partialorder %v436_v47, 0.0 }
 0x2d9   :  { %v445_v48 = vpop.xlane.xlu1 %444 }
 0x2da   :  { %3088 = vrsqrt.f32 %v445_v48  ;;  %v439_v49 = vpop.xlane.xlu0 %438  ;;  %vm469_vm7 = vcmp.eq.f32.partialorder %v445_v48, inf  ;;  %v472_v60 = vand.u32 2147483648, %v445_v48  ;;  %vm471_vm8 = vcmp.eq.f32.partialorder %v445_v48, 0.0 }
 0x2db   :  { %3090 = vrsqrt.f32 %v439_v49  ;;  %vm455_vm9 = vcmp.eq.f32.partialorder %v439_v49, inf  ;;  %v458_v63 = vand.u32 2147483648, %v439_v49  ;;  %vm457_vm10 = vcmp.eq.f32.partialorder %v439_v49, 0.0 }
 0x2dd   :  { %v442_v50 = vpop.xlane.xlu1 %441 }
 0x2de   :  { %3092 = vrsqrt.f32 %v442_v50  ;;  %vm462_vm11 = vcmp.eq.f32.partialorder %v442_v50, inf  ;;  %v465_v9 = vand.u32 2147483648, %v442_v50  ;;  %vm464_vm12 = vcmp.eq.f32.partialorder %v442_v50, 0.0 }
 0x2e1   :  { %v3087_v51 = vpop.eup %3086  ;;  %v3705_v20 = vpop.permute.xlu1 %502 }
 0x2e2   :  { %v447_v52 = vmul.f32 %v3087_v51, %v436_v47  ;;  %v3708_v25 = vpop.permute.xlu0 %492 }
 0x2e4   :  { %v3089_v54 = vpop.eup %3088  ;;  %v449_v55 = vsel %vm448_vm5, %v436_v47, %v447_v52 }
 0x2e5   :  { %v3091_v56 = vpop.eup %3090  ;;  %v452_v57 = vsel %vm450_vm6, %v451_v53, %v449_v55  ;;  %v468_v58 = vmul.f32 %v3089_v54, %v445_v48  ;;  %v3713_v34 = vpop.permute.xlu1 %507 }
 0x2e6   :  { %v474_v59 = vmax.f32 %v452_v57, 1e-12  ;;  %v454_v61 = vmul.f32 %v3091_v56, %v439_v49 }
 0x2e7   :  { %v470_v62 = vsel %vm469_vm7, %v445_v48, %v468_v58 }
 0x2e8   :  { %v3093_v0 = vpop.eup %3092  ;;  %3094 = vrcp.f32 %v474_v59  ;;  %v473_v1 = vsel %vm471_vm8, %v472_v60, %v470_v62  ;;  %v456_v3 = vsel %vm455_vm9, %v439_v49, %v454_v61  ;;  %v990_v59 = vld [vmem:[#allocation11] sm:$0xff]  ;;  %v991_v60 = vld [vmem:[#allocation11 + $0x8] sm:$0xff]  ;;  %v992_v61 = vld [vmem:[#allocation11 + $0x10] sm:$0xff]  ;;  %vm1177_vm8 = vcmask 64512  }
 0x2e9   :  { %v477_v4 = vmax.f32 %v473_v1, 1e-12  ;;  %v459_v5 = vsel %vm457_vm10, %v458_v63, %v456_v3  ;;  %v461_v6 = vmul.f32 %v3093_v0, %v442_v50  ;;  %v3019_v62 = vpack.c.bf16 %v991_v60, %v990_v59  ;;  %v993_v63 = vld [vmem:[#allocation11 + $0x18] sm:$0x3f] }
 0x2ea   :  { %v475_v8 = vmax.f32 %v459_v5, 1e-12  ;;  %v3023_v0 = vpack.c.bf16 %v993_v63, %v992_v61 }
 0x2eb   :  { %3096 = vrcp.f32 %v477_v4  ;;  %v463_v11 = vsel %vm462_vm11, %v442_v50, %v461_v6  ;;  %3020 = vmatprep.subr.bf16.mxu0 %v3019_v62 }
 0x2ec   :  { %3098 = vrcp.f32 %v475_v8  ;;  %v466_v13 = vsel %vm464_vm12, %v465_v9, %v463_v11 }
 0x2ed   :  { %v476_v14 = vmax.f32 %v466_v13, 1e-12 }
 0x2ef   :  { %3100 = vrcp.f32 %v476_v14 }
 0x2f2   :  { %v3095_v15 = vpop.eup %3094 }
 0x2f3   :  { %v479_v16 = vmul.f32 %v3095_v15, %v3666_v23 }
 0x2f5   :  { %v3097_v17 = vpop.eup %3096  ;;  %v486_v24 = vmax.f32 %v479_v16, 0.0 }
 0x2f6   :  { %v3099_v18 = vpop.eup %3098  ;;  %v485_v19 = vmul.f32 %v3097_v17, %v3670_v26 }
 0x2f7   :  { %v481_v21 = vmul.f32 %v3099_v18, %v3664_v22  ;;  %v510_v23 = vmul.f32 %v3708_v25, %v486_v24 }
 0x2f8   :  { %v489_v31 = vmax.f32 %v485_v19, 0.0 }
 0x2f9   :  { %v3101_v27 = vpop.eup %3100  ;;  %v487_v29 = vmax.f32 %v481_v21, 0.0 }
 0x2fa   :  { %v483_v30 = vmul.f32 %v3101_v27, %v3672_v28  ;;  %v513_v22 = vmul.f32 %v3713_v34, %v489_v31 }
 0x2fb   :  { %v511_v32 = vmul.f32 %v3701_v46, %v487_v29 }
 0x2fc   :  { %v488_v33 = vmax.f32 %v483_v30, 0.0 }
 0x2fd   :  { %v2993_v26 = vpack.c.bf16 %v511_v32, %v510_v23 }
 0x2fe   :  { %v512_v35 = vmul.f32 %v3705_v20, %v488_v33 }
 0x2ff   :  { %2994 = vmatprep.subr.bf16.mxu1 %v2993_v26 }
 0x300   :  { %v2997_v36 = vpack.c.bf16 %v513_v22, %v512_v35  ;;  %2996 = vmatpush3.bf16.msra.mxu1 %v2993_v26 }
 0x302   :  { %2998 = vmatprep.subr.bf16.mxu1 %v2997_v36 }
 0x303   :  { %2836 = vmatmul.mubr.msk.f32.vlgmr.msra.gmra.mrb[2].mxu1 %vm160_vm0, %v3647_v10 }
 0x304   :  { %3000 = vmatpush3.bf16.msra.mxu1 %v2997_v36  ;;  %2842 = vmatprep.mubr.msk.f32.mxu1 %vm160_vm0, %v3643_v7 }
 0x307   :  { %2843 = vmatmul.mubr.msk.f32.vlgmr.msra.gmra.mrb[4].mxu1 %vm160_vm0, %v3649_v12 }
 0x308   :  { %2863 = vmatprep.mubr.msk.f32.mxu1 %vm160_vm0, %v3633_v2 }
 0x3d6   :  { %v2837_v28 = vpop.f32.mrb[2].mxu1 }
 0x3d7   :  { %v580_v37 = vpop.f32.mrb[3].mxu1 }
 0x3d8   :  { %2853 = vmatprep.mubr.msk.f32.mxu0 %vm433_vm1, %v580_v37 }
 0x3d9   :  { %2854 = vmatmul.mubr.msk.f32.vlgmr.msra.gmra.mrb[6].mxu0 %vm433_vm1, %v2837_v28 }
 0x3da   :  { %v2844_v38 = vpop.f32.mrb[4].mxu1  ;;  %3022 = vmatpush3.bf16.msra.mxu0 %v3019_v62 }
 0x3db   :  { %v655_v39 = vpop.f32.mrb[5].mxu1  ;;  %3025 = vmatprep.subr.msk.bf16.mxu0 %vm3693_vm4, %v3023_v0 }
 0x3dc   :  { %2856 = vmatprep.mubr.msk.f32.mxu0 %vm433_vm1, %v655_v39 }
 0x3dd   :  { %2857 = vmatmul.mubr.msk.f32.gmra.mrb[8].mxu0 %vm433_vm1, %v2844_v38 }
 0x3de   :  { %3028 = vmatpush3.bf16.msk.msra.mxu0 %vm3693_vm4, %v3023_v0 }
 0x4ac   :  { %v2855_v41 = vpop.f32.mrb[6].mxu0 }
 0x4ad   :  { %v3729_v42 = vadd.f32 %v2855_v41, %v2683_v40  ;;  %v757_v43 = vpop.f32.mrb[7].mxu0 }
 0x4ae   :  { %v3731_v44 = vadd.f32 %v2683_v40, %v757_v43 }
 0x4af   :  { %v777_v47 = vmul.f32 %v3729_v42, %v3729_v42 }
 0x4b0   :  { %v2858_v48 = vpop.f32.mrb[8].mxu0  ;;  %v776_v49 = vmul.f32 %v3731_v44, %v3731_v44 }
 0x4b1   :  { %v767_v50 = vpop.f32.mrb[9].mxu0  ;;  %v783_v51 = vsel %vm433_vm1, %v777_v47, 0.0  ;;  %v3738_v52 = vadd.f32 %v2858_v48, %v2683_v40 }
 0x4b2   :  { %v3740_v53 = vadd.f32 %v2683_v40, %v767_v50  ;;  %784 = vadd.xlane.f32.xlu0 %v783_v51  ;;  %v780_v54 = vsel %vm433_vm1, %v776_v49, 0.0 }
 0x4b3   :  { %781 = vadd.xlane.f32.xlu1 %v780_v54  ;;  %v779_v57 = vmul.f32 %v3738_v52, %v3738_v52 }
 0x4b4   :  { %v778_v55 = vmul.f32 %v3740_v53, %v3740_v53 }
 0x4b5   :  { %v789_v58 = vsel %vm433_vm1, %v779_v57, 0.0 }
 0x4b6   :  { %v786_v56 = vsel %vm433_vm1, %v778_v55, 0.0 }
 0x4b7   :  { %787 = vadd.xlane.f32.xlu1 %v786_v56 }
 0x4bb   :  { %790 = vadd.xlane.f32.xlu1 %v789_v58 }
 0x53f   :  { %v785_v1 = vpop.xlane.xlu0 %784 }
 0x540   :  { %3102 = vrsqrt.f32 %v785_v1  ;;  %v782_v3 = vpop.xlane.xlu1 %781  ;;  %vm801_vm13 = vcmp.eq.f32.partialorder %v785_v1, inf  ;;  %v804_v11 = vand.u32 2147483648, %v785_v1  ;;  %vm803_vm14 = vcmp.eq.f32.partialorder %v785_v1, 0.0 }
 0x541   :  { %3104 = vrsqrt.f32 %v782_v3  ;;  %vm794_vm15 = vcmp.eq.f32.partialorder %v782_v3, inf  ;;  %v797_v15 = vand.u32 2147483648, %v782_v3  ;;  %vm796_vm2 = vcmp.eq.f32.partialorder %v782_v3, 0.0 }
 0x544   :  { %v788_v4 = vpop.xlane.xlu1 %787 }
 0x545   :  { %3106 = vrsqrt.f32 %v788_v4  ;;  %vm808_vm3 = vcmp.eq.f32.partialorder %v788_v4, inf  ;;  %v811_v29 = vand.u32 2147483648, %v788_v4  ;;  %vm810_vm5 = vcmp.eq.f32.partialorder %v788_v4, 0.0 }
 0x548   :  { %v791_v5 = vpop.xlane.xlu1 %790 }
 0x549   :  { %3108 = vrsqrt.f32 %v791_v5  ;;  %vm815_vm6 = vcmp.eq.f32.partialorder %v791_v5, inf  ;;  %v818_v26 = vand.u32 2147483648, %v791_v5  ;;  %vm817_vm7 = vcmp.eq.f32.partialorder %v791_v5, 0.0 }
 0x54a   :  { %v3103_v6 = vpop.eup %3102 }
 0x54b   :  { %v3105_v8 = vpop.eup %3104  ;;  %v800_v9 = vmul.f32 %v3103_v6, %v785_v1 }
 0x54c   :  { %v793_v13 = vmul.f32 %v3105_v8, %v782_v3 }
 0x54d   :  { %v802_v14 = vsel %vm801_vm13, %v785_v1, %v800_v9 }
 0x54e   :  { %v805_v16 = vsel %vm803_vm14, %v804_v11, %v802_v14  ;;  %v795_v17 = vsel %vm794_vm15, %v782_v3, %v793_v13 }
 0x54f   :  { %v3107_v18 = vpop.eup %3106  ;;  %v821_v19 = vmax.f32 %v805_v16, 1e-12  ;;  %v798_v21 = vsel %vm796_vm2, %v797_v15, %v795_v17 }
 0x550   :  { %v820_v24 = vmax.f32 %v798_v21, 1e-12  ;;  %v807_v27 = vmul.f32 %v3107_v18, %v788_v4 }
 0x551   :  { %3110 = vrcp.f32 %v821_v19 }
 0x552   :  { %3112 = vrcp.f32 %v820_v24  ;;  %v809_v30 = vsel %vm808_vm3, %v788_v4, %v807_v27  ;;  %vm1234_vm3 = vcmask 310512  }
 0x553   :  { %v3109_v31 = vpop.eup %3108  ;;  %v812_v32 = vsel %vm810_vm5, %v811_v29, %v809_v30  ;;  %vm3422_vm5 = vmmov 0  }
 0x554   :  { %v822_v23 = vmax.f32 %v812_v32, 1e-12  ;;  %v814_v33 = vmul.f32 %v3109_v31, %v791_v5 }
 0x556   :  { %3114 = vrcp.f32 %v822_v23  ;;  %v816_v35 = vsel %vm815_vm6, %v791_v5, %v814_v33 }
 0x557   :  { %v819_v22 = vsel %vm817_vm7, %v818_v26, %v816_v35 }
 0x558   :  { %v823_v36 = vmax.f32 %v819_v22, 1e-12 }
 0x55a   :  { %3116 = vrcp.f32 %v823_v36 }
 0x55b   :  { %v3111_v28 = vpop.eup %3110 }
 0x55c   :  { %v3113_v37 = vpop.eup %3112  ;;  %v827_v38 = vmul.f32 %v3111_v28, %v3729_v42 }
 0x55d   :  { %v825_v39 = vmul.f32 %v3113_v37, %v3731_v44 }
 0x55e   :  { %v833_v40 = vmax.f32 %v827_v38, 0.0 }
 0x55f   :  { %v832_v41 = vmax.f32 %v825_v39, 0.0 }
 0x560   :  { %v3115_v43 = vpop.eup %3114  ;;  %v837_v47 = vmul.f32 %v833_v40, %v3701_v46 }
 0x561   :  { %v836_v48 = vmul.f32 %v832_v41, %v3708_v25  ;;  %v829_v49 = vmul.f32 %v3115_v43, %v3740_v53 }
 0x563   :  { %v3011_v50 = vpack.c.bf16 %v837_v47, %v836_v48  ;;  %v834_v55 = vmax.f32 %v829_v49, 0.0 }
 0x564   :  { %v3117_v51 = vpop.eup %3116 }
 0x565   :  { %3012 = vmatprep.subr.bf16.mxu1 %v3011_v50  ;;  %v831_v54 = vmul.f32 %v3117_v51, %v3738_v52  ;;  %v838_v42 = vmul.f32 %v834_v55, %v3705_v20  ;;  %v2693_v20 = vld [vmem:[#allocation13] ss:$0 sm:$0xff] }
 0x566   :  { %3014 = vmatpush3.bf16.msra.mxu1 %v3011_v50 }
 0x567   :  { %v835_v56 = vmax.f32 %v831_v54, 0.0 }
 0x569   :  { %2864 = vmatmul.mubr.msk.f32.vlgmr.msra.gmra.mrb[6].mxu1 %vm160_vm0, %v3647_v10  ;;  %v839_v44 = vmul.f32 %v835_v56, %v3713_v34 }
 0x56a   :  { %2870 = vmatprep.mubr.msk.f32.mxu1 %vm160_vm0, %v3643_v7 }
 0x56b   :  { %v3015_v46 = vpack.c.bf16 %v839_v44, %v838_v42 }
 0x56d   :  { %3016 = vmatprep.subr.bf16.mxu1 %v3015_v46 }
 0x56e   :  { %3018 = vmatpush3.bf16.msra.mxu1 %v3015_v46 }
 0x571   :  { %2871 = vmatmul.mubr.msk.f32.vlgmr.msra.gmra.mrb[8].mxu1 %vm160_vm0, %v3649_v12 }
 0x63c   :  { %v2865_v25 = vpop.f32.mrb[6].mxu1 }
 0x63d   :  { %v906_v52 = vpop.f32.mrb[7].mxu1 }
 0x63e   :  { %2881 = vmatprep.mubr.msk.f32.mxu0 %vm433_vm1, %v906_v52 }
 0x63f   :  { %2882 = vmatmul.mubr.msk.f32.vlgmr.msra.gmra.mrb[10].mxu0 %vm433_vm1, %v2865_v25 }
 0x644   :  { %v2872_v53 = vpop.f32.mrb[8].mxu1 }
 0x645   :  { %v981_v57 = vpop.f32.mrb[9].mxu1 }
 0x646   :  { %2884 = vmatprep.mubr.msk.f32.mxu0 %vm433_vm1, %v981_v57 }
 0x647   :  { %2885 = vmatmul.mubr.msk.f32.gmra.mrb[12].mxu0 %vm433_vm1, %v2872_v53 }
 0x712   :  { %v2883_v34 = vpop.f32.mrb[10].mxu0 }
 0x713   :  { %v3771_v58 = vadd.f32 %v2883_v34, %v2693_v20  ;;  %v1082_v59 = vpop.f32.mrb[11].mxu0 }
 0x714   :  { %v3773_v60 = vadd.f32 %v2693_v20, %v1082_v59 }
 0x715   :  { %v3777_v61 = vmul.f32 %v3771_v58, %v3771_v58 }
 0x716   :  { %v3781_v62 = vmul.f32 %v3773_v60, %v3773_v60 }
 0x717   :  { %1167 = vrot.lane.b32.xlu0 %v3777_v61, %s3420_s2 }
 0x718   :  { %1165 = vrot.lane.b32.xlu1 %v3781_v62, %s3420_s2 }
 0x71a   :  { %v2886_v63 = vpop.f32.mrb[12].mxu0 }
 0x71b   :  { %v1092_v0 = vpop.f32.mrb[13].mxu0  ;;  %v3789_v3 = vadd.f32 %v2886_v63, %v2693_v20 }
 0x71c   :  { %v3787_v1 = vadd.f32 %v2693_v20, %v1092_v0 }
 0x71d   :  { %v3799_v5 = vmul.f32 %v3789_v3, %v3789_v3 }
 0x71e   :  { %v3793_v4 = vmul.f32 %v3787_v1, %v3787_v1 }
 0x720   :  { %1169 = vrot.lane.b32.xlu1 %v3793_v4, %s3420_s2 }
 0x724   :  { %1171 = vrot.lane.b32.xlu1 %v3799_v5, %s3420_s2 }
 0x789   :  { %v1168_v6 = vpop.permute.xlu0 %1167 }
 0x78a   :  { %v1166_v8 = vpop.permute.xlu1 %1165  ;;  %v1181_v9 = vsel %vm1177_vm8, %v1168_v6, 0.0 }
 0x78b   :  { %1182 = vadd.xlane.f32.xlu0 %v1181_v9  ;;  %v1178_v11 = vsel %vm1177_vm8, %v1166_v8, 0.0 }
 0x78c   :  { %1179 = vadd.xlane.f32.xlu1 %v1178_v11 }
 0x792   :  { %v1170_v13 = vpop.permute.xlu1 %1169 }
 0x793   :  { %v1184_v14 = vsel %vm1177_vm8, %v1170_v13, 0.0 }
 0x794   :  { %1185 = vadd.xlane.f32.xlu0 %v1184_v14 }
 0x796   :  { %v1172_v15 = vpop.permute.xlu1 %1171 }
 0x797   :  { %v1187_v16 = vsel %vm1177_vm8, %v1172_v15, 0.0 }
 0x798   :  { %1188 = vadd.xlane.f32.xlu1 %v1187_v16 }
 0x818   :  { %v1183_v17 = vpop.xlane.xlu0 %1182 }
 0x819   :  { %3118 = vrsqrt.f32 %v1183_v17  ;;  %v1180_v18 = vpop.xlane.xlu1 %1179  ;;  %vm1199_vm9 = vcmp.eq.f32.partialorder %v1183_v17, inf  ;;  %vm1201_vm10 = vcmp.eq.f32.partialorder %v1183_v17, 0.0  ;;  %v1202_v29 = vand.u32 2147483648, %v1183_v17 }
 0x81a   :  { %3120 = vrsqrt.f32 %v1180_v18  ;;  %vm1192_vm11 = vcmp.eq.f32.partialorder %v1180_v18, inf  ;;  %v1195_v23 = vand.u32 2147483648, %v1180_v18  ;;  %vm1194_vm12 = vcmp.eq.f32.partialorder %v1180_v18, 0.0 }
 0x821   :  { %v1186_v19 = vpop.xlane.xlu0 %1185 }
 0x822   :  { %3122 = vrsqrt.f32 %v1186_v19  ;;  %vm1206_vm13 = vcmp.eq.f32.partialorder %v1186_v19, inf  ;;  %v1209_v38 = vand.u32 2147483648, %v1186_v19  ;;  %vm1208_vm14 = vcmp.eq.f32.partialorder %v1186_v19, 0.0 }
 0x823   :  { %v3119_v21 = vpop.eup %3118 }
 0x824   :  { %v3121_v24 = vpop.eup %3120  ;;  %v1198_v27 = vmul.f32 %v3119_v21, %v1183_v17 }
 0x825   :  { %v1191_v30 = vmul.f32 %v3121_v24, %v1180_v18  ;;  %v1189_v31 = vpop.xlane.xlu1 %1188 }
 0x826   :  { %v1200_v32 = vsel %vm1199_vm9, %v1183_v17, %v1198_v27  ;;  %3124 = vrsqrt.f32 %v1189_v31  ;;  %vm1213_vm15 = vcmp.eq.f32.partialorder %v1189_v31, inf  ;;  %v1216_v48 = vand.u32 2147483648, %v1189_v31 }
 0x827   :  { %v1203_v33 = vsel %vm1201_vm10, %v1202_v29, %v1200_v32  ;;  %v1193_v26 = vsel %vm1192_vm11, %v1180_v18, %v1191_v30  ;;  %vm1215_vm2 = vcmp.eq.f32.partialorder %v1189_v31, 0.0 }
 0x828   :  { %v1219_v35 = vmax.f32 %v1203_v33, 1e-12  ;;  %v1196_v22 = vsel %vm1194_vm12, %v1195_v23, %v1193_v26 }
 0x829   :  { %v1218_v36 = vmax.f32 %v1196_v22, 1e-12 }
 0x82a   :  { %3126 = vrcp.f32 %v1219_v35 }
 0x82b   :  { %3128 = vrcp.f32 %v1218_v36 }
 0x82c   :  { %v3123_v28 = vpop.eup %3122 }
 0x82d   :  { %v1205_v37 = vmul.f32 %v3123_v28, %v1186_v19 }
 0x82f   :  { %v1207_v39 = vsel %vm1206_vm13, %v1186_v19, %v1205_v37  ;;  %v1105_v37 = vsel %vm433_vm1, %v3781_v62, 0.0 }
 0x830   :  { %v3125_v40 = vpop.eup %3124  ;;  %v1210_v41 = vsel %vm1208_vm14, %v1209_v38, %v1207_v39  ;;  %v1108_v38 = vsel %vm433_vm1, %v3777_v61, 0.0  ;;  %v1111_v39 = vsel %vm433_vm1, %v3793_v4, 0.0 }
 0x831   :  { %v1220_v43 = vmax.f32 %v1210_v41, 1e-12  ;;  %v1212_v47 = vmul.f32 %v3125_v40, %v1189_v31  ;;  %v1114_v40 = vsel %vm433_vm1, %v3799_v5, 0.0  ;;  %v3421_v41 = vmov 0.0|0.0  }
 0x832   :  { %3029 = vmatprep.subr.bf16.mxu1 %v3421_v41  ;;  %3035 = vmatprep.subr.bf16.mxu0 %v3421_v41  ;;  %v3036_v5 = vpack.c.bf16 %v3647_v10, %v3633_v2 }
 0x833   :  { %v1214_v49 = vsel %vm1213_vm15, %v1189_v31, %v1212_v47  ;;  %3130 = vrcp.f32 %v1220_v43 }
 0x834   :  { %v3127_v50 = vpop.eup %3126  ;;  %v1217_v51 = vsel %vm1215_vm2, %v1216_v48, %v1214_v49  ;;  %3037 = vmatpush3.bf16.msra.mxu0 %v3036_v5 }
 0x835   :  { %v3129_v54 = vpop.eup %3128  ;;  %v1221_v55 = vmax.f32 %v1217_v51, 1e-12  ;;  %v1225_v56 = vmul.f32 %v3127_v50, %v3771_v58  ;;  %3041 = vmatprep.subr.bf16.mxu0 %v3421_v41 }
 0x836   :  { %v1223_v42 = vmul.f32 %v3129_v54, %v3773_v60  ;;  %v3423_v54 = vmov 0.0  }
 0x837   :  { %v1231_v44 = vmax.f32 %v1225_v56, 0.0  ;;  %3132 = vrcp.f32 %v1221_v55  ;;  %2891 = vmatprep.mubr.msk.f32.mxu1 %vm3422_vm5, %v3423_v54  ;;  %2905 = vmatprep.mubr.msk.f32.mxu0 %vm3422_vm5, %v3423_v54 }
 0x838   :  { %v1230_v46 = vmax.f32 %v1223_v42, 0.0 }
 0x839   :  { %v1238_v25 = vsel %vm1234_vm3, %v1231_v44, -inf }
 0x83a   :  { %1239 = vmax.xlane.f32.xlu1 %v1238_v25  ;;  %v1235_v52 = vsel %vm1234_vm3, %v1230_v46, -inf }
 0x83b   :  { %1236 = vmax.xlane.f32.xlu0 %v1235_v52 }
 0x83d   :  { %v3131_v53 = vpop.eup %3130 }
 0x83e   :  { %v1227_v57 = vmul.f32 %v3131_v53, %v3787_v1 }
 0x840   :  { %v1232_v20 = vmax.f32 %v1227_v57, 0.0 }
 0x841   :  { %v3133_v34 = vpop.eup %3132 }
 0x842   :  { %v1241_v59 = vsel %vm1234_vm3, %v1232_v20, -inf  ;;  %v1229_v63 = vmul.f32 %v3133_v34, %v3789_v3 }
 0x843   :  { %1242 = vmax.xlane.f32.xlu0 %v1241_v59 }
 0x844   :  { %v1233_v0 = vmax.f32 %v1229_v63, 0.0 }
 0x846   :  { %v1244_v6 = vsel %vm1234_vm3, %v1233_v0, -inf }
 0x847   :  { %1245 = vmax.xlane.f32.xlu1 %v1244_v6 }
 0x8c7   :  { %v1240_v8 = vpop.xlane.xlu1 %1239 }
 0x8c8   :  { %v1248_v9 = vsub.f32 %v1231_v44, %v1240_v8  ;;  %v1237_v11 = vpop.xlane.xlu0 %1236 }
 0x8c9   :  { %v1247_v13 = vsub.f32 %v1230_v46, %v1237_v11 }
 0x8ca   :  { %v1253_v14 = vmul.f32 1.442695, %v1248_v9 }
 0x8cb   :  { %v1251_v15 = vmul.f32 1.442695, %v1247_v13 }
 0x8cc   :  { %3134 = vpow2.f32 %v1253_v14 }
 0x8cd   :  { %3136 = vpow2.f32 %v1251_v15 }
 0x8d0   :  { %v1243_v16 = vpop.xlane.xlu0 %1242 }
 0x8d1   :  { %v1249_v17 = vsub.f32 %v1232_v20, %v1243_v16 }
 0x8d3   :  { %v1255_v18 = vmul.f32 1.442695, %v1249_v17 }
 0x8d4   :  { %v1246_v19 = vpop.xlane.xlu1 %1245 }
 0x8d5   :  { %3138 = vpow2.f32 %v1255_v18  ;;  %v1250_v21 = vsub.f32 %v1233_v0, %v1246_v19 }
 0x8d6   :  { %v3135_v24 = vpop.eup %3134 }
 0x8d7   :  { %v3137_v27 = vpop.eup %3136  ;;  %v1257_v29 = vmul.f32 1.442695, %v1250_v21  ;;  %1265 = vrot.lane.b32.xlu1 %v3135_v24, %s3420_s2 }
 0x8d8   :  { %1263 = vrot.lane.b32.xlu0 %v3137_v27, %s3420_s2 }
 0x8d9   :  { %3140 = vpow2.f32 %v1257_v29 }
 0x8df   :  { %v3139_v30 = vpop.eup %3138 }
 0x8e0   :  { %1267 = vrot.lane.b32.xlu1 %v3139_v30, %s3420_s2 }
 0x8e3   :  { %v3141_v31 = vpop.eup %3140 }
 0x8e4   :  { %1269 = vrot.lane.b32.xlu0 %v3141_v31, %s3420_s2 }
 0x949   :  { %v1266_v32 = vpop.permute.xlu1 %1265 }
 0x94a   :  { %v1264_v23 = vpop.permute.xlu0 %1263  ;;  %v1278_v33 = vsel %vm1177_vm8, %v1266_v32, 0.0 }
 0x94b   :  { %1279 = vadd.xlane.f32.xlu0 %v1278_v33  ;;  %v1275_v26 = vsel %vm1177_vm8, %v1264_v23, 0.0 }
 0x94c   :  { %1276 = vadd.xlane.f32.xlu1 %v1275_v26 }
 0x952   :  { %v1268_v35 = vpop.permute.xlu1 %1267 }
 0x953   :  { %v1281_v22 = vsel %vm1177_vm8, %v1268_v35, 0.0 }
 0x954   :  { %1282 = vadd.xlane.f32.xlu0 %v1281_v22 }
 0x956   :  { %v1270_v36 = vpop.permute.xlu0 %1269 }
 0x957   :  { %v1284_v28 = vsel %vm1177_vm8, %v1270_v36, 0.0 }
 0x958   :  { %1285 = vadd.xlane.f32.xlu1 %v1284_v28  ;;  %1106 = vadd.xlane.f32.xlu0 %v1105_v37 }
 0x95c   :  { %1109 = vadd.xlane.f32.xlu1 %v1108_v38  ;;  %1112 = vadd.xlane.f32.xlu0 %v1111_v39 }
 0x960   :  { %1115 = vadd.xlane.f32.xlu1 %v1114_v40 }
 0x9d8   :  { %v1280_v62 = vpop.xlane.xlu0 %1279 }
 0x9d9   :  { %3142 = vrcp.f32 %v1280_v62  ;;  %v1277_v43 = vpop.xlane.xlu1 %1276 }
 0x9da   :  { %3144 = vrcp.f32 %v1277_v43 }
 0x9e1   :  { %v1283_v47 = vpop.xlane.xlu0 %1282 }
 0x9e2   :  { %3146 = vrcp.f32 %v1283_v47 }
 0x9e3   :  { %v3143_v61 = vpop.eup %3142 }
 0x9e4   :  { %v3145_v48 = vpop.eup %3144  ;;  %v1290_v4 = vmul.f32 %v3143_v61, %v3135_v24 }
 0x9e5   :  { %v1107_v49 = vpop.xlane.xlu0 %1106  ;;  %v1286_v50 = vpop.xlane.xlu1 %1285  ;;  %v1288_v51 = vmul.f32 %v3145_v48, %v3137_v27 }
 0x9e6   :  { %3148 = vrsqrt.f32 %v1107_v49  ;;  %1299 = vrot.lane.b32.xlu1 %v1290_v4, %s3420_s2  ;;  %vm1119_vm6 = vcmp.eq.f32.partialorder %v1107_v49, inf  ;;  %v1122_v10 = vand.u32 2147483648, %v1107_v49  ;;  %vm1121_vm7 = vcmp.eq.f32.partialorder %v1107_v49, 0.0 }
 0x9e7   :  { %3150 = vrcp.f32 %v1286_v50  ;;  %1297 = vrot.lane.b32.xlu0 %v1288_v51, %s3420_s2 }
 0x9e9   :  { %v1110_v55 = vpop.xlane.xlu1 %1109  ;;  %v1113_v18 = vpop.xlane.xlu0 %1112 }
 0x9ea   :  { %3152 = vrsqrt.f32 %v1110_v55  ;;  %vm1126_vm9 = vcmp.eq.f32.partialorder %v1110_v55, inf  ;;  %v1129_v59 = vand.u32 2147483648, %v1110_v55  ;;  %vm1128_vm10 = vcmp.eq.f32.partialorder %v1110_v55, 0.0 }
 0x9eb   :  { %vm1133_vm12 = vcmp.eq.f32.partialorder %v1113_v18, inf  ;;  %v1136_v26 = vand.u32 2147483648, %v1113_v18  ;;  %vm1135_vm14 = vcmp.eq.f32.partialorder %v1113_v18, 0.0 }
 0x9ec   :  { %v3147_v56 = vpop.eup %3146 }
 0x9ed   :  { %v1292_v42 = vmul.f32 %v3147_v56, %v3139_v30  ;;  %v1116_v17 = vpop.xlane.xlu1 %1115 }
 0x9ee   :  { %vm1140_vm11 = vcmp.eq.f32.partialorder %v1116_v17, inf  ;;  %v1143_v23 = vand.u32 2147483648, %v1116_v17  ;;  %vm1142_vm13 = vcmp.eq.f32.partialorder %v1116_v17, 0.0 }
 0x9ef   :  { %1410 = vrot.lane.b32.xlu1 %v1292_v42, %s3420_s2 }
 0x9f0   :  { %v3149_v44 = vpop.eup %3148 }
 0x9f1   :  { %v3151_v46 = vpop.eup %3150  ;;  %v1118_v2 = vmul.f32 %v3149_v44, %v1107_v49 }
 0x9f2   :  { %v1294_v25 = vmul.f32 %v3151_v46, %v3141_v31  ;;  %v1953_v46 = vld [vmem:[%s3980_s9] sm:$0xff] }
 0x9f3   :  { %v1120_v52 = vsel %vm1119_vm6, %v1107_v49, %v1118_v2  ;;  %v1954_v2 = vld [vmem:[%s3980_s9 + $0x8] sm:$0xff] }
 0x9f4   :  { %v1123_v53 = vsel %vm1121_vm7, %v1122_v10, %v1120_v52  ;;  %1412 = vrot.lane.b32.xlu0 %v1294_v25, %s3420_s2  ;;  %v3153_v57 = vpop.eup %3152  ;;  %v1955_v10 = vld [vmem:[%s3980_s9 + $0x10] sm:$0xff]  ;;  %v3047_v25 = vpack.c.bf16 %v1954_v2, %v1953_v46  ;;  %v1956_v52 = vld [vmem:[%s3980_s9 + $0x18] sm:$0x3f] }
 0x9f5   :  { %v1145_v20 = vmax.f32 %v1123_v53, 1e-12  ;;  %v1125_v34 = vmul.f32 %v3153_v57, %v1110_v55  ;;  %v3051_v53 = vpack.c.bf16 %v1956_v52, %v1955_v10 }
 0x9f7   :  { %3154 = vrcp.f32 %v1145_v20  ;;  %v1127_v63 = vsel %vm1126_vm9, %v1110_v55, %v1125_v34 }
 0x9f8   :  { %v1130_v0 = vsel %vm1128_vm10, %v1129_v59, %v1127_v63  ;;  %v2707_v63 = vld [vmem:[%s3981_s10] ss:$0 sm:$0xff] }
 0x9f9   :  { %v1146_v6 = vmax.f32 %v1130_v0, 1e-12 }
 0x9fb   :  { %3156 = vrcp.f32 %v1146_v6 }
 0x9fc   :  { %3158 = vrsqrt.f32 %v1116_v17 }
 0x9fd   :  { %3160 = vrsqrt.f32 %v1113_v18 }
 0xa01   :  { %v3155_v8 = vpop.eup %3154 }
 0xa02   :  { %v1150_v9 = vmul.f32 %v3155_v8, %v3773_v60 }
 0xa04   :  { %v1157_v14 = vmax.f32 %v1150_v9, 0.0 }
 0xa05   :  { %v3157_v11 = vpop.eup %3156 }
 0xa06   :  { %v1152_v13 = vmul.f32 %v3157_v11, %v3771_v58  ;;  %v3159_v58 = vpop.eup %3158 }
 0xa07   :  { %v3161_v60 = vpop.eup %3160  ;;  %v1139_v30 = vmul.f32 %v3159_v58, %v1116_v17 }
 0xa08   :  { %v1158_v15 = vmax.f32 %v1152_v13, 0.0  ;;  %v1132_v31 = vmul.f32 %v3161_v60, %v1113_v18 }
 0xa09   :  { %v1141_v32 = vsel %vm1140_vm11, %v1116_v17, %v1139_v30  ;;  %v2219_v17 = vld [vmem:[#allocation14 + $0x8] sm:$0xff]  ;;  %vm2380_vm11 = vcmask 277744  }
 0xa0a   :  { %v3030_v16 = vpack.c.bf16 %v1158_v15, %v1157_v14  ;;  %v1134_v33 = vsel %vm1133_vm12, %v1113_v18, %v1132_v31  ;;  %v1144_v35 = vsel %vm1142_vm13, %v1143_v23, %v1141_v32 }
 0xa0b   :  { %v1137_v22 = vsel %vm1135_vm14, %v1136_v26, %v1134_v33  ;;  %v1148_v36 = vmax.f32 %v1144_v35, 1e-12 }
 0xa0c   :  { %3031 = vmatpush3.bf16.msra.mxu1 %v3030_v16  ;;  %v1147_v28 = vmax.f32 %v1137_v22, 1e-12  ;;  %v2218_v16 = vld [vmem:[#allocation14] sm:$0xff] }
 0xa0d   :  { %3032 = vmatprep.subr.bf16.mxu1 %v3421_v41  ;;  %3162 = vrcp.f32 %v1148_v36  ;;  %v3057_v18 = vpack.c.bf16 %v2219_v17, %v2218_v16 }
 0xa0e   :  { %3164 = vrcp.f32 %v1147_v28 }
 0xa17   :  { %v3163_v37 = vpop.eup %3162 }
 0xa18   :  { %v3165_v38 = vpop.eup %3164  ;;  %v1156_v39 = vmul.f32 %v3163_v37, %v3789_v3 }
 0xa19   :  { %v1154_v40 = vmul.f32 %v3165_v38, %v3787_v1  ;;  %v3039_v1 = vpack.c.bf16 %v3649_v12, %v3643_v7 }
 0xa1a   :  { %v1160_v62 = vmax.f32 %v1156_v39, 0.0 }
 0xa1b   :  { %v1159_v43 = vmax.f32 %v1154_v40, 0.0  ;;  %v2220_v40 = vld [vmem:[#allocation14 + $0x10] sm:$0xff] }
 0xa1d   :  { %v3033_v61 = vpack.c.bf16 %v1160_v62, %v1159_v43  ;;  %v2221_v62 = vld [vmem:[#allocation14 + $0x18] sm:$0x3f] }
 0xa1e   :  { %v3061_v43 = vpack.c.bf16 %v2221_v62, %v2220_v40 }
 0xa58   :  { %v1300_v19 = vpop.permute.xlu1 %1299 }
 0xa59   :  { %v1298_v21 = vpop.permute.xlu0 %1297 }
 0xa5a   :  { %v3042_v24 = vpack.c.bf16 %v1300_v19, %v1298_v21  ;;  %1303 = vxpose.xlu1.b32.start [1/2] (short) (narrow) %v1298_v21, 8 }
 0xa5e   :  { %1304 = vxpose.xlu1.b32.end [2/2] (short) (narrow) %v1300_v19, 8 }
 0xa61   :  { %v1411_v27 = vpop.permute.xlu1 %1410 }
 0xa62   :  { %1416 = vxpose.xlu0.b32.start [1/2] (short) (narrow) %v1411_v27, 8 }
 0xa66   :  { %v1413_v29 = vpop.permute.xlu0 %1412 }
 0xa67   :  { %1417 = vxpose.xlu0.b32.end [2/2] (short) (narrow) %v1413_v29, 8  ;;  %v3045_v48 = vpack.c.bf16 %v1413_v29, %v1411_v27 }
 0xada   :  { %v1319_v47 = vpop.trf.xlu1 }
 0xadb   :  { %2892 = vmatmul.mubr.msk.f32.vlgmr.msra.gmra.mrb[10].mxu1 %vm160_vm0, %v1319_v47  ;;  %2906 = vmatmul.mubr.msk.f32.vlgmr.msra.gmra.mrb[14].mxu0 %vm160_vm0, %v1319_v47 }
 0xadc   :  { %3034 = vmatpush3.bf16.msra.mxu1 %v3033_v61  ;;  %3043 = vmatpush3.bf16.msra.mxu0 %v3042_v24 }
 0xadd   :  { %2898 = vmatprep.mubr.msk.f32.mxu1 %vm3422_vm5, %v3423_v54  ;;  %3038 = vmatprep.subr.bf16.mxu1 %v3421_v41 }
 0xade   :  { %2919 = vmatprep.mubr.msk.f32.mxu0 %vm3422_vm5, %v3423_v54  ;;  %2929 = vmatprep.subr.mxu0 %v3423_v54 }
 0xae3   :  { %v1432_v3 = vpop.trf.xlu0 }
 0xae4   :  { %2899 = vmatmul.mubr.msk.f32.vlgmr.msra.gmra.mrb[12].mxu1 %vm160_vm0, %v1432_v3 }
 0xae5   :  { %3040 = vmatpush3.bf16.msra.mxu1 %v3039_v1  ;;  %2912 = vmatprep.mubr.msk.f32.mxu1 %vm3422_vm5, %v3423_v54 }
 0xae6   :  { %3044 = vmatprep.subr.bf16.mxu1 %v3421_v41 }
 0xae8   :  { %2913 = vmatmul.mubr.msk.f32.vlgmr.msra.gmra.mrb[14].mxu1 %vm160_vm0, %v1432_v3 }
 0xae9   :  { %3046 = vmatpush3.bf16.msra.mxu1 %v3045_v48  ;;  %2926 = vmatprep.mubr.msk.f32.mxu1 %vm3422_vm5, %v3423_v54  ;;  %v2713_v48 = vld [vmem:[%s3983_s12] ss:$0 sm:$0xff]  ;;  %s3424_s12 = smov [#allocation16]  }
 0xaea   :  { %2934 = vmatprep.subr.mxu1 %v3423_v54  ;;  %s2657_s1 = sshll.u32 %s3424_s12, 4  ;;  %s2658_s1 = int_to_ptr.vmem [resolvable:$true] %s2657_s1 }
 0xaeb   :  { %s3374_s22 = scalar_lea.vmem %s2658_s1, 32  ;;  %p3379_p9 = scmp.lt.s32.totalorder %s2658_s1, %s2658_s1 }
 0xaec   :  { %p3375_p8 = scmp.ne.s32.totalorder %s2658_s1, %s3374_s22  ;;  %p3380_p10 = scmp.lt.s32.totalorder %s3374_s22, %s3374_s22 }
 0xaee   :  { %p3381_p11 = por %p3380_p10, %p3379_p9 }
 0xaf0   :  { %p3382_p12 = pnand %p3381_p11, %p3375_p8 }
 0xbae   :  { %v1404_v4 = vpop.f32.mrb[10].mxu1  ;;  %v1587_v7 = vpop.f32.mrb[14].mxu0 }
 0xbaf   :  { %v2893_v12 = vpop.f32.mrb[11].mxu1  ;;  %v2907_v49 = vpop.f32.mrb[15].mxu0  ;;  %2920 = vmatmul.mubr.msk.f32.vlgmr.msra.gmra.mrb[16].mxu0 %vm160_vm0, %v1587_v7 }
 0xbb0   :  { %2930 = vmatpush3.msra.mxu0 %v1404_v4  ;;  %2931 = vmatprep.mubr.msk.f32.mxu0 %vm3422_vm5, %v3423_v54 }
 0xbb1   :  { %3048 = vmatprep.subr.bf16.mxu0 %v3047_v25 }
 0xbb7   :  { %v1517_v41 = vpop.f32.mrb[12].mxu1 }
 0xbb8   :  { %v2900_v50 = vpop.f32.mrb[13].mxu1 }
 0xbbb   :  { %v1657_v51 = vpop.f32.mrb[14].mxu1 }
 0xbbc   :  { %v2914_v5 = vpop.f32.mrb[15].mxu1  ;;  %2927 = vmatmul.mubr.msk.f32.vlgmr.msra.gmra.mrb[16].mxu1 %vm160_vm0, %v1657_v51 }
 0xbbd   :  { %2935 = vmatpush3.msra.mxu1 %v1517_v41  ;;  %2936 = vmatprep.mubr.msk.f32.mxu1 %vm3422_vm5, %v3423_v54 }
 0xbbe   :  { %2950 = vmatprep.subr.mxu1 %v3423_v54 }
 0xc82   :  { %v3874_v55 = vpop.f32.mrb[16].mxu0 }
 0xc83   :  { %v2921_v56 = vpop.f32.mrb[17].mxu0  ;;  %2932 = vmatmul.mubr.msk.f32.vlgmr.msra.gmra.mrb[18].mxu0 %vm1177_vm8, %v3874_v55 }
 0xc84   :  { %3050 = vmatpush3.bf16.msra.mxu0 %v3047_v25 }
 0xc85   :  { %3053 = vmatprep.subr.msk.bf16.mxu0 %vm3693_vm4, %v3051_v53 }
 0xc88   :  { %3056 = vmatpush3.bf16.msk.msra.mxu0 %vm3693_vm4, %v3051_v53 }
 0xc89   :  { %3058 = vmatprep.subr.bf16.mxu0 %v3057_v18 }
 0xc8f   :  { %v3878_v42 = vpop.f32.mrb[16].mxu1 }
 0xc90   :  { %v2928_v44 = vpop.f32.mrb[17].mxu1  ;;  %2937 = vmatmul.mubr.msk.f32.vlgmr.msra.gmra.mrb[18].mxu1 %vm1177_vm8, %v3878_v42 }
 0xc91   :  { %2952 = vmatprep.mubr.msk.f32.mxu1 %vm3422_vm5, %v3423_v54 }
 0xd56   :  { %v1876_v57 = vpop.f32.mrb[18].mxu0 }
 0xd57   :  { %v2933_v20 = vpop.f32.mrb[19].mxu0  ;;  %2947 = vmatprep.mubr.msk.f32.mxu0 %vm433_vm1, %v1876_v57 }
 0xd63   :  { %v1949_v34 = vpop.f32.mrb[18].mxu1 }
 0xd64   :  { %v2938_v59 = vpop.f32.mrb[19].mxu1  ;;  %2948 = vmatmul.mubr.msk.f32.vlgmr.msra.gmra.mrb[20].mxu0 %vm433_vm1, %v1949_v34 }
 0xd65   :  { %3060 = vmatpush3.bf16.msra.mxu0 %v3057_v18 }
 0xd66   :  { %3063 = vmatprep.subr.msk.bf16.mxu0 %vm3693_vm4, %v3061_v43 }
 0xd69   :  { %3066 = vmatpush3.bf16.msk.msra.mxu0 %vm3693_vm4, %v3061_v43  ;;  %vm2351_vm4 = vcmask 31744  }
 0xe37   :  { %v2949_v0 = vpop.f32.mrb[20].mxu0 }
 0xe38   :  { %v2045_v6 = vadd.f32 %v2949_v0, %v2707_v63  ;;  %v2039_v8 = vpop.f32.mrb[21].mxu0 }
 0xe39   :  { %v2040_v9 = vadd.f32 %v2707_v63, %v2039_v8 }
 0xe3a   :  { %v2049_v11 = vmul.f32 %v2045_v6, %v2045_v6 }
 0xe3b   :  { %v2048_v13 = vmul.f32 %v2040_v9, %v2040_v9 }
 0xe3c   :  { %v2053_v14 = vsel %vm433_vm1, %v2049_v11, 0.0 }
 0xe3d   :  { %2054 = vadd.xlane.f32.xlu1 %v2053_v14  ;;  %v2050_v15 = vsel %vm433_vm1, %v2048_v13, 0.0 }
 0xe3e   :  { %2051 = vadd.xlane.f32.xlu0 %v2050_v15 }
 0xeca   :  { %v2055_v19 = vpop.xlane.xlu1 %2054 }
 0xecb   :  { %3166 = vrsqrt.f32 %v2055_v19  ;;  %v2052_v21 = vpop.xlane.xlu0 %2051  ;;  %vm2065_vm0 = vcmp.eq.f32.partialorder %v2055_v19, inf  ;;  %v2068_v58 = vand.u32 2147483648, %v2055_v19  ;;  %vm2067_vm15 = vcmp.eq.f32.partialorder %v2055_v19, 0.0 }
 0xecc   :  { %3168 = vrsqrt.f32 %v2052_v21  ;;  %vm2058_vm2 = vcmp.eq.f32.partialorder %v2052_v21, inf  ;;  %v2061_v31 = vand.u32 2147483648, %v2052_v21  ;;  %vm2060_vm3 = vcmp.eq.f32.partialorder %v2052_v21, 0.0 }
 0xed5   :  { %v3167_v24 = vpop.eup %3166 }
 0xed6   :  { %v3169_v27 = vpop.eup %3168  ;;  %v2064_v29 = vmul.f32 %v3167_v24, %v2055_v19 }
 0xed7   :  { %v2057_v60 = vmul.f32 %v3169_v27, %v2052_v21 }
 0xed8   :  { %v2066_v30 = vsel %vm2065_vm0, %v2055_v19, %v2064_v29  ;;  %vm2629_vm0 = vcmask 240640  }
 0xed9   :  { %v2069_v32 = vsel %vm2067_vm15, %v2068_v58, %v2066_v30  ;;  %v2059_v23 = vsel %vm2058_vm2, %v2052_v21, %v2057_v60 }
 0xeda   :  { %v2071_v33 = vmax.f32 %v2069_v32, 1e-12  ;;  %v2062_v26 = vsel %vm2060_vm3, %v2061_v31, %v2059_v23 }
 0xedb   :  { %v2070_v35 = vmax.f32 %v2062_v26, 1e-12 }
 0xedc   :  { %3170 = vrcp.f32 %v2071_v33 }
 0xedd   :  { %3172 = vrcp.f32 %v2070_v35 }
 0xee6   :  { %v3171_v22 = vpop.eup %3170 }
 0xee7   :  { %v3173_v36 = vpop.eup %3172  ;;  %v2075_v37 = vmul.f32 %v3171_v22, %v2045_v6 }
 0xee8   :  { %v2073_v28 = vmul.f32 %v3173_v36, %v2040_v9 }
 0xee9   :  { %v2077_v39 = vmax.f32 %v2075_v37, 0.0 }
 0xeea   :  { %v2076_v38 = vmax.f32 %v2073_v28, 0.0 }
 0xeec   :  { %2951 = vmatpush3.msra.mxu1 %v2076_v38 }
 0xeed   :  { %2953 = vmatmul.mubr.msk.f32.vlgmr.msra.gmra.mrb[20].mxu1 %vm1177_vm8, %v3874_v55  ;;  %2955 = vmatprep.subr.mxu1 %v3423_v54 }
 0xeee   :  { %2956 = vmatpush3.msra.mxu1 %v2077_v39  ;;  %2957 = vmatprep.mubr.msk.f32.mxu1 %vm3422_vm5, %v3423_v54 }
 0xeef   :  { %2971 = vmatprep.subr.mxu1 %v3423_v54 }
 0xef1   :  { %2958 = vmatmul.mubr.msk.f32.vlgmr.msra.gmra.mrb[22].mxu1 %vm1177_vm8, %v3878_v42 }
 0xef2   :  { %2973 = vmatprep.mubr.msk.f32.mxu1 %vm3422_vm5, %v3423_v54 }
 0xfc0   :  { %v2144_v47 = vpop.f32.mrb[20].mxu1 }
 0xfc1   :  { %v2954_v61 = vpop.f32.mrb[21].mxu1  ;;  %2968 = vmatprep.mubr.msk.f32.mxu0 %vm433_vm1, %v2144_v47 }
 0xfc4   :  { %v2214_v1 = vpop.f32.mrb[22].mxu1 }
 0xfc5   :  { %v2959_v3 = vpop.f32.mrb[23].mxu1  ;;  %2969 = vmatmul.mubr.msk.f32.vlgmr.msra.gmra.mrb[22].mxu0 %vm433_vm1, %v2214_v1 }
0x1098   :  { %v2970_v4 = vpop.f32.mrb[22].mxu0 }
0x1099   :  { %v3926_v7 = vadd.f32 %v2970_v4, %v2713_v48  ;;  %v2304_v12 = vpop.f32.mrb[23].mxu0 }
0x109a   :  { %v3928_v49 = vadd.f32 %v2713_v48, %v2304_v12 }
0x109b   :  { %v3932_v45 = vmul.f32 %v3926_v7, %v3926_v7 }
0x109c   :  { %v2313_v41 = vmul.f32 %v3928_v49, %v3928_v49 }
0x109d   :  { %2347 = vrot.lane.b32.xlu1 %v3932_v45, %s3420_s2  ;;  %v2318_v23 = vsel %vm433_vm1, %v3932_v45, 0.0 }
0x109e   :  { %2345 = vrot.lane.b32.xlu0 %v2313_v41, %s3420_s2  ;;  %v2315_v32 = vsel %vm433_vm1, %v2313_v41, 0.0 }
0x110f   :  { %v2348_v50 = vpop.permute.xlu1 %2347 }
0x1110   :  { %v2346_v51 = vpop.permute.xlu0 %2345  ;;  %v2355_v5 = vsel %vm2351_vm4, %v2348_v50, 0.0 }
0x1111   :  { %2356 = vadd.xlane.f32.xlu0 %v2355_v5  ;;  %v2352_v55 = vsel %vm2351_vm4, %v2346_v51, 0.0 }
0x1112   :  { %2353 = vadd.xlane.f32.xlu1 %v2352_v55 }
0x119e   :  { %v2357_v56 = vpop.xlane.xlu0 %2356 }
0x119f   :  { %3174 = vrsqrt.f32 %v2357_v56  ;;  %v2354_v42 = vpop.xlane.xlu1 %2353  ;;  %vm2367_vm6 = vcmp.eq.f32.partialorder %v2357_v56, inf  ;;  %v2370_v10 = vand.u32 2147483648, %v2357_v56  ;;  %vm2369_vm7 = vcmp.eq.f32.partialorder %v2357_v56, 0.0 }
0x11a0   :  { %3176 = vrsqrt.f32 %v2354_v42  ;;  %vm2360_vm9 = vcmp.eq.f32.partialorder %v2354_v42, inf  ;;  %v2363_v53 = vand.u32 2147483648, %v2354_v42  ;;  %vm2362_vm10 = vcmp.eq.f32.partialorder %v2354_v42, 0.0 }
0x11a9   :  { %v3175_v44 = vpop.eup %3174 }
0x11aa   :  { %v3177_v46 = vpop.eup %3176  ;;  %v2366_v2 = vmul.f32 %v3175_v44, %v2357_v56 }
0x11ab   :  { %v2359_v25 = vmul.f32 %v3177_v46, %v2354_v42 }
0x11ac   :  { %v2368_v52 = vsel %vm2367_vm6, %v2357_v56, %v2366_v2 }
0x11ad   :  { %v2371_v57 = vsel %vm2369_vm7, %v2370_v10, %v2368_v52  ;;  %v2361_v20 = vsel %vm2360_vm9, %v2354_v42, %v2359_v25 }
0x11ae   :  { %v2373_v34 = vmax.f32 %v2371_v57, 1e-12  ;;  %v2364_v59 = vsel %vm2362_vm10, %v2363_v53, %v2361_v20 }
0x11af   :  { %v2372_v63 = vmax.f32 %v2364_v59, 1e-12 }
0x11b0   :  { %3178 = vrcp.f32 %v2373_v34 }
0x11b1   :  { %3180 = vrcp.f32 %v2372_v63 }
0x11ba   :  { %v3179_v0 = vpop.eup %3178 }
0x11bb   :  { %v3181_v6 = vpop.eup %3180  ;;  %v2377_v8 = vmul.f32 %v3179_v0, %v3926_v7 }
0x11bc   :  { %v2375_v9 = vmul.f32 %v3181_v6, %v3928_v49 }
0x11bd   :  { %v2379_v11 = vmax.f32 %v2377_v8, 0.0 }
0x11be   :  { %v2378_v13 = vmax.f32 %v2375_v9, 0.0 }
0x11bf   :  { %v2384_v14 = vsel %vm2380_vm11, %v2379_v11, -inf }
0x11c0   :  { %2385 = vmax.xlane.f32.xlu1 %v2384_v14  ;;  %v2381_v15 = vsel %vm2380_vm11, %v2378_v13, -inf }
0x11c1   :  { %2382 = vmax.xlane.f32.xlu0 %v2381_v15 }
0x124d   :  { %v2386_v16 = vpop.xlane.xlu1 %2385 }
0x124e   :  { %v2388_v17 = vsub.f32 %v2379_v11, %v2386_v16  ;;  %v2383_v18 = vpop.xlane.xlu0 %2382 }
0x124f   :  { %v2387_v19 = vsub.f32 %v2378_v13, %v2383_v18 }
0x1250   :  { %v2391_v21 = vmul.f32 1.442695, %v2388_v17 }
0x1251   :  { %v2389_v24 = vmul.f32 1.442695, %v2387_v19 }
0x1252   :  { %3182 = vpow2.f32 %v2391_v21 }
0x1253   :  { %3184 = vpow2.f32 %v2389_v24 }
0x125c   :  { %v3183_v27 = vpop.eup %3182 }
0x125d   :  { %v3185_v29 = vpop.eup %3184  ;;  %2397 = vrot.lane.b32.xlu1 %v3183_v27, %s3420_s2 }
0x125e   :  { %2395 = vrot.lane.b32.xlu0 %v3185_v29, %s3420_s2 }
0x12cf   :  { %v2398_v58 = vpop.permute.xlu1 %2397 }
0x12d0   :  { %v2396_v60 = vpop.permute.xlu0 %2395  ;;  %v2404_v30 = vsel %vm2351_vm4, %v2398_v58, 0.0 }
0x12d1   :  { %2405 = vadd.xlane.f32.xlu0 %v2404_v30  ;;  %v2401_v31 = vsel %vm2351_vm4, %v2396_v60, 0.0 }
0x12d2   :  { %2402 = vadd.xlane.f32.xlu1 %v2401_v31 }
0x12d5   :  { %2316 = vadd.xlane.f32.xlu0 %v2315_v32 }
0x12d6   :  { %2319 = vadd.xlane.f32.xlu1 %v2318_v23 }
0x135e   :  { %v2406_v33 = vpop.xlane.xlu0 %2405 }
0x135f   :  { %3186 = vrcp.f32 %v2406_v33  ;;  %v2403_v26 = vpop.xlane.xlu1 %2402 }
0x1360   :  { %3188 = vrcp.f32 %v2403_v26 }
0x1362   :  { %v2317_v35 = vpop.xlane.xlu0 %2316 }
0x1363   :  { %3190 = vrsqrt.f32 %v2317_v35  ;;  %vm2323_vm12 = vcmp.eq.f32.partialorder %v2317_v35, inf  ;;  %v2326_v40 = vand.u32 2147483648, %v2317_v35  ;;  %vm2325_vm1 = vcmp.eq.f32.partialorder %v2317_v35, 0.0  ;;  %v2320_v48 = vpop.xlane.xlu1 %2319 }
0x1364   :  { %vm2330_vm13 = vcmp.eq.f32.partialorder %v2320_v48, inf  ;;  %v2333_v51 = vand.u32 2147483648, %v2320_v48  ;;  %vm2332_vm14 = vcmp.eq.f32.partialorder %v2320_v48, 0.0 }
0x1369   :  { %v3187_v22 = vpop.eup %3186 }
0x136a   :  { %v3189_v36 = vpop.eup %3188  ;;  %v2410_v28 = vmul.f32 %v3187_v22, %v3183_v27 }
0x136b   :  { %v2408_v37 = vmul.f32 %v3189_v36, %v3185_v29 }
0x136c   :  { %2521 = vrot.lane.b32.xlu1 %v2410_v28, %s3420_s2 }
0x136d   :  { %v3191_v38 = vpop.eup %3190  ;;  %2412 = vrot.lane.b32.xlu0 %v2408_v37, %s3420_s2 }
0x136e   :  { %v2322_v39 = vmul.f32 %v3191_v38, %v2317_v35 }
0x1370   :  { %v2324_v62 = vsel %vm2323_vm12, %v2317_v35, %v2322_v39 }
0x1371   :  { %v2327_v43 = vsel %vm2325_vm1, %v2326_v40, %v2324_v62 }
0x1372   :  { %v2335_v47 = vmax.f32 %v2327_v43, 1e-12 }
0x1374   :  { %3192 = vrcp.f32 %v2335_v47 }
0x1375   :  { %3194 = vrsqrt.f32 %v2320_v48 }
0x137e   :  { %v3193_v61 = vpop.eup %3192 }
0x137f   :  { %v2338_v1 = vmul.f32 %v3193_v61, %v3928_v49  ;;  %v3195_v45 = vpop.eup %3194 }
0x1380   :  { %v2329_v41 = vmul.f32 %v3195_v45, %v2320_v48 }
0x1381   :  { %v2341_v3 = vmax.f32 %v2338_v1, 0.0 }
0x1382   :  { %v2331_v50 = vsel %vm2330_vm13, %v2320_v48, %v2329_v41 }
0x1383   :  { %2972 = vmatpush3.msra.mxu1 %v2341_v3  ;;  %v2334_v5 = vsel %vm2332_vm14, %v2333_v51, %v2331_v50 }
0x1384   :  { %2976 = vmatprep.subr.mxu1 %v3423_v54  ;;  %v2336_v55 = vmax.f32 %v2334_v5, 1e-12 }
0x1386   :  { %3196 = vrcp.f32 %v2336_v55 }
0x1390   :  { %v3197_v49 = vpop.eup %3196 }
0x1391   :  { %v2340_v56 = vmul.f32 %v3197_v49, %v3926_v7 }
0x1393   :  { %v2342_v44 = vmax.f32 %v2340_v56, 0.0 }
0x13de   :  { %v2522_v4 = vpop.permute.xlu1 %2521 }
0x13df   :  { %2524 = vxpose.xlu0.b32.start.end [1/1] (short) (narrow) %v2522_v4, 8  ;;  %v2413_v12 = vpop.permute.xlu0 %2412 }
0x13e0   :  { %2415 = vxpose.xlu1.b32.start.end [1/1] (short) (narrow) %v2413_v12, 8 }
0x145f   :  { %v2540_v46 = vpop.trf.xlu0 }
0x1460   :  { %v2431_v42 = vpop.trf.xlu1 }
0x1461   :  { %2974 = vmatmul.mubr.msk.f32.vlgmr.msra.gmra.mrb[24].mxu1 %vm1177_vm8, %v2431_v42 }
0x1462   :  { %2977 = vmatpush3.msra.mxu1 %v2342_v44  ;;  %2978 = vmatprep.mubr.msk.f32.mxu1 %vm3422_vm5, %v3423_v54  ;;  %vm2649_vm5 = vcmask 238592  }
0x1465   :  { %2979 = vmatmul.mubr.msk.f32.vlgmr.msra.gmra.mrb[26].mxu1 %vm1177_vm8, %v2540_v46  ;;  %vm2646_vm8 = vcmask 1041409  }
0x1534   :  { %v2516_v2 = vpop.f32.mrb[24].mxu1 }
0x1535   :  { %v2630_v10 = vsel %vm2629_vm0, %v2516_v2, 0.0  ;;  %v2975_v25 = vpop.f32.mrb[25].mxu1 }
0x1536   :  { %v2631_v52 = vrot.slane %v2630_v10, 4 }
0x1538   :  { %v2632_v53 = vadd.f32 %v2631_v52, %v2630_v10  ;;  %v2625_v57 = vpop.f32.mrb[26].mxu1 }
0x1539   :  { %v2637_v20 = vsel %vm2629_vm0, %v2625_v57, 0.0  ;;  %v2980_v7 = vpop.f32.mrb[27].mxu1 }
0x153a   :  { %v2633_v34 = vrot.slane %v2632_v53, 2  ;;  %v2638_v59 = vrot.slane %v2637_v20, 4 }
0x153c   :  { %v2634_v63 = vadd.f32 %v2633_v34, %v2632_v53  ;;  %v2639_v0 = vadd.f32 %v2638_v59, %v2637_v20 }
0x153e   :  { %v2640_v6 = vrot.slane %v2639_v0, 2  ;;  %v2635_v8 = vrot.slane %v2634_v63, 1 }
0x1540   :  { %v2641_v9 = vadd.f32 %v2640_v6, %v2639_v0  ;;  %v2636_v54 = vadd.f32 %v2635_v8, %v2634_v63 }
0x1542   :  { %v2642_v11 = vrot.slane %v2641_v9, 1 }
0x1544   :  { %v2643_v13 = vadd.f32 %v2642_v11, %v2641_v9 }
0x1546   :  { %v2647_v14 = vsel %vm2646_vm8, %v2643_v13, %v2636_v54 }
0x1547   :  { %2650 = vst.msk [vmem:[#allocation16] sm:$0x3] %vm2649_vm5, %v2647_v14 }
0x1548   :  { %3385 = shalt.err (!%p3382_p12)
}
0x1549   :  { %s3386_s11 = scalar_lea.hbm %s3984_s13, 32 }
0x154a   :  { %p3387_p13 = scmp.ne.s32.totalorder %s3984_s13, %s3386_s11  ;;  %p3390_p0 = scmp.lt.u32.totalorder %s3386_s11, %s3984_s13 }
0x154c   :  { %p3392_p1 = pnand %p3390_p0, %p3387_p13 }
0x154e   :  { %3395 = shalt.err (!%p3392_p1)
}
0x154f   :  { %2660 = dma.vmem_to_hbm [thread:$0]  %s2658_s1, 32, %s3984_s13, [#allocation4]  }
0x1550   :  { %3406 = dma.done.wait [#allocation4], 32  }
0x1551   :  { %3407 = vsyncadd [#allocation4], 4294967264 }
0x1552   :  { %2664 = vsyncpa [#allocation3], 1 }
0x1553   :  { %2665 = vsyncpa [#allocation6], 1 }
0x1554   :  { %2666 = vsyncpa [#allocation9], 1 }
0x1555   :  { %2667 = vsyncpa [#allocation12], 1 }
0x1556   :  { %2668 = vsyncpa [#allocation15], 1 }
0x1557   :  { %2669 = vsyncpa [#allocation4], 1 }

</bundles_post_ra>
